<compile_context>
chip_gen: v7x
topology: tpu7x:2x2x1
jax: 0.10.0
libtpu: 0.0.40
codegen_flags: <defaults>
</compile_context>

<pallas_src>
import functools

import jax
import jax.numpy as jnp
from jax import lax
from jax.experimental import pallas as pl
from jax.experimental.pallas import tpu as pltpu

EPS = 1e-5      # nn.BatchNorm2d default
LANE = 128      # pad channel dims to a multiple of the TPU lane width


def _round_up(x, m):
    return (x + m - 1) // m * m


# ---------------------------------------------------------------------------
# Fused bottleneck kernel: one grid step == one image (NHWC, padded channels)
# ---------------------------------------------------------------------------
def _bottleneck_kernel(x_ref, w1_ref, s1_ref, b1_ref,
                       w2_ref, s2_ref, b2_ref,
                       w3_ref, s3_ref, b3_ref,
                       *refs, H, W, emit_preact):
    if emit_preact:
        out_ref, preact_ref, h1p_ref, acc2_ref = refs
    else:
        out_ref, h1p_ref, acc2_ref = refs
        preact_ref = None

    HW = H * W
    CK = x_ref.shape[-1]          # padded in channels (== padded out channels)
    PK = w2_ref.shape[-1]         # padded mid channels ("planes")
    PK3 = 3 * PK

    # ---- conv1 (1x1) + bn1 + relu  (bf16 MXU operands, f32 affine) ---------
    h1 = jnp.dot(x_ref[...].reshape(HW, CK).astype(jnp.bfloat16), w1_ref[...],
                 preferred_element_type=jnp.float32)                # (HW, PK)
    h1 = jnp.maximum(h1 * s1_ref[...] + b1_ref[...], 0.0)
    h1_bf = h1.astype(jnp.bfloat16).reshape(H, W, PK)               # single cast

    # ---- stage conv2 input ---------------------------------------------------
    # bf16 scratch (H+2, W, 3*PK): 1 zero row of halo top & bottom, and the
    # three dx (column) shifts of h1 concatenated along channels:
    #   lanes [0,PK)      -> h1[y, x-1]   (dx=0, zero at x==0)
    #   lanes [PK,2PK)    -> h1[y, x  ]   (dx=1)
    #   lanes [2PK,3PK)   -> h1[y, x+1]   (dx=2, zero at x==W-1)
    zrow = jnp.zeros((W, PK3), jnp.bfloat16)
    h1p_ref[0] = zrow                                # top halo row
    h1p_ref[H + 1] = zrow                            # bottom halo row
    zcol = jnp.zeros((H, 1, PK), jnp.bfloat16)
    h1p_ref[1:H + 1, :, 0:PK] = jnp.concatenate([zcol, h1_bf[:, :W - 1, :]], axis=1)
    h1p_ref[1:H + 1, :, PK:2 * PK] = h1_bf
    h1p_ref[1:H + 1, :, 2 * PK:PK3] = jnp.concatenate([h1_bf[:, 1:, :], zcol], axis=1)

    # ---- conv2 (3x3, stride 1, pad 1) + bn2 + relu ---------------------------
    # Each dy tap is a leading-dim (untiled) row window -> one K=3*PK matmul.
    # Accumulate in a VMEM scratch to keep the f32 accumulator out of vregs.
    acc2_ref[...] = jnp.dot(h1p_ref[0:H].reshape(HW, PK3), w2_ref[0],
                            preferred_element_type=jnp.float32)
    acc2_ref[...] += jnp.dot(h1p_ref[1:H + 1].reshape(HW, PK3), w2_ref[1],
                             preferred_element_type=jnp.float32)
    acc2_ref[...] += jnp.dot(h1p_ref[2:H + 2].reshape(HW, PK3), w2_ref[2],
                             preferred_element_type=jnp.float32)
    h2 = jnp.maximum(acc2_ref[...] * s2_ref[...] + b2_ref[...], 0.0)

    # ---- conv3 (1x1) + bn3 + identity residual + relu ------------------------
    acc3 = jnp.dot(h2.astype(jnp.bfloat16), w3_ref[...],
                   preferred_element_type=jnp.float32)              # (HW, CK)
    # Re-read x for the f32 residual instead of holding it live all kernel.
    preact = acc3 * s3_ref[...] + b3_ref[...] + x_ref[...].reshape(HW, CK)
    if emit_preact:
        preact_ref[...] = preact
    out_ref[...] = jnp.maximum(preact, 0.0)


# ---------------------------------------------------------------------------
# Wrapper: BN folding, channel padding, layout plumbing
# ---------------------------------------------------------------------------
def _bn_fold(gamma, beta, mean, var, padded):
    scale = gamma / jnp.sqrt(var + EPS)
    shift = beta - mean * scale
    pad = padded - gamma.shape[0]
    scale = jnp.pad(scale, (0, pad)).reshape(1, padded).astype(jnp.float32)
    shift = jnp.pad(shift, (0, pad)).reshape(1, padded).astype(jnp.float32)
    return scale, shift


def _pad2(m, shape):
    return jnp.pad(m, ((0, shape[0] - m.shape[0]), (0, shape[1] - m.shape[1])))


def bottleneck_forward_nhwc(x_nhwc, params, stride=1, is_last=False):
    """Fused bottleneck on an NHWC activation (no transposes)."""
    if stride != 1:
        raise NotImplementedError("downsample=None config requires stride == 1")

    x = x_nhwc.astype(jnp.float32)
    n, h, w, cin = x.shape
    planes = params["conv1_w"].shape[0]
    cout = params["conv3_w"].shape[0]
    if cin != cout:
        raise NotImplementedError(
            "identity residual requires inplanes == planes * expansion")
    # NOTE: W a multiple of 8 keeps the in-kernel (H,W,C)<->(H*W,C) reshapes
    # layout-free; other W values are still correct but add layout copies.

    ck = _round_up(cin, LANE)      # padded in/out channels (cin == cout)
    pk = _round_up(planes, LANE)   # padded mid channels
    hw = h * w

    # Folded / padded parameters (bf16 MXU operands, f32 BN affine).  Padded
    # rows/cols and padded scale/shift entries are zero, so padded channels
    # stay exactly zero through the whole block.
    w1m = _pad2(params["conv1_w"][:, :, 0, 0].T, (ck, pk)).astype(jnp.bfloat16)
    # conv2: (O, I, 3, 3) -> (dy, dx, I, O) -> pad -> (3, 3*pk, pk) so the
    # dx*pk..dx*pk+I-1 rows of w2cat[dy] multiply the dx-shifted channel slot.
    w2t = jnp.transpose(params["conv2_w"], (2, 3, 1, 0))              # (3,3,I,O)
    w2t = jnp.pad(w2t, ((0, 0), (0, 0), (0, pk - planes), (0, pk - planes)))
    w2cat = w2t.reshape(3, 3 * pk, pk).astype(jnp.bfloat16)
    w3m = _pad2(params["conv3_w"][:, :, 0, 0].T, (pk, ck)).astype(jnp.bfloat16)
    s1, b1 = _bn_fold(params["bn1_gamma"], params["bn1_beta"],
                      params["bn1_mean"], params["bn1_var"], pk)
    s2, b2 = _bn_fold(params["bn2_gamma"], params["bn2_beta"],
                      params["bn2_mean"], params["bn2_var"], pk)
    s3, b3 = _bn_fold(params["bn3_gamma"], params["bn3_beta"],
                      params["bn3_mean"], params["bn3_var"], ck)

    xp = jnp.pad(x, ((0, 0), (0, 0), (0, 0), (0, ck - cin))) if ck != cin else x

    def full(shape):
        return pl.BlockSpec(shape, lambda b: (0,) * len(shape))

    act_spec = pl.BlockSpec((None, hw, ck), lambda b: (b, 0, 0))
    act_shape = jax.ShapeDtypeStruct((n, hw, ck), jnp.float32)
    if is_last:
        out_specs = (act_spec, act_spec)
        out_shape = (act_shape, act_shape)
    else:
        out_specs = act_spec
        out_shape = act_shape

    n_out = 2 if is_last else 1
    flops = 2 * n * hw * (ck * pk + 9 * pk * pk + pk * ck)
    bytes_accessed = (xp.size * 4
                      + (w1m.size + w2cat.size + w3m.size) * 2
                      + (s1.size + b1.size + s2.size + b2.size + s3.size + b3.size) * 4
                      + n_out * n * hw * ck * 4)

    result = pl.pallas_call(
        functools.partial(_bottleneck_kernel, H=h, W=w, emit_preact=is_last),
        grid=(n,),
        in_specs=[
            pl.BlockSpec((None, h, w, ck), lambda b: (b, 0, 0, 0)),   # x (per image)
            full((ck, pk)), full((1, pk)), full((1, pk)),             # conv1 / bn1
            full((3, 3 * pk, pk)), full((1, pk)), full((1, pk)),      # conv2 / bn2
            full((pk, ck)), full((1, ck)), full((1, ck)),             # conv3 / bn3
        ],
        out_specs=out_specs,
        out_shape=out_shape,
        scratch_shapes=[pltpu.VMEM((h + 2, w, 3 * pk), jnp.bfloat16),  # conv2 staging
                        pltpu.VMEM((hw, pk), jnp.float32)],            # conv2 acc
        compiler_params=pltpu.CompilerParams(
            dimension_semantics=("parallel",),
            vmem_limit_bytes=32 * 1024 * 1024),
        cost_estimate=pl.CostEstimate(flops=int(flops), transcendentals=0,
                                      bytes_accessed=int(bytes_accessed)),
    )(xp, w1m, s1, b1, w2cat, s2, b2, w3m, s3, b3)

    if is_last:
        out, preact = result
        out = out.reshape(n, h, w, ck)[..., :cout]
        preact = preact.reshape(n, h, w, ck)[..., :cout]
        return out, preact
    return result.reshape(n, h, w, ck)[..., :cout]


def bottleneck_forward(x_nchw, params, stride=1, is_last=False):
    """NCHW wrapper matching the PyTorch module's layout."""
    x = jnp.transpose(x_nchw, (0, 2, 3, 1))
    res = bottleneck_forward_nhwc(x, params, stride=stride, is_last=is_last)
    if is_last:
        out, preact = res
        return (jnp.transpose(out, (0, 3, 1, 2)),
                jnp.transpose(preact, (0, 3, 1, 2)))
    return jnp.transpose(res, (0, 3, 1, 2))


# ---------------------------------------------------------------------------
# Pure-JAX reference (lax.conv) for correctness checks
# ---------------------------------------------------------------------------
def reference_forward(x, params, stride=1, is_last=False, matmul_dtype=jnp.float32):
    def conv(y, w, s, p):
        return lax.conv_general_dilated(
            y.astype(matmul_dtype), w.astype(matmul_dtype), (s, s),
            [(p, p), (p, p)], dimension_numbers=("NCHW", "OIHW", "NCHW"),
            preferred_element_type=jnp.float32)

    def bn(y, g, b, m, v):
        g, b, m, v = (t[None, :, None, None] for t in (g, b, m, v))
        return (y - m) / jnp.sqrt(v + EPS) * g + b

    out = jax.nn.relu(bn(conv(x, params["conv1_w"], 1, 0),
                         params["bn1_gamma"], params["bn1_beta"],
                         params["bn1_mean"], params["bn1_var"]))
    out = jax.nn.relu(bn(conv(out, params["conv2_w"], stride, 1),
                         params["bn2_gamma"], params["bn2_beta"],
                         params["bn2_mean"], params["bn2_var"]))
    out = bn(conv(out, params["conv3_w"], 1, 0),
             params["bn3_gamma"], params["bn3_beta"],
             params["bn3_mean"], params["bn3_var"])
    preact = out + x
    out = jax.nn.relu(preact)
    return (out, preact) if is_last else out


# ---------------------------------------------------------------------------
# Deterministic parameter init
# ---------------------------------------------------------------------------
def init_params(key, inplanes, planes):
    expansion = 4
    ks = jax.random.split(key, 6)

    def bn_p(k, c):
        k1, k2, k3, k4 = jax.random.split(k, 4)
        return (jax.random.uniform(k1, (c,), jnp.float32, 0.5, 1.5),   # gamma
                jax.random.normal(k2, (c,), jnp.float32) * 0.1,        # beta
                jax.random.normal(k3, (c,), jnp.float32) * 0.1,        # running_mean
                jax.random.uniform(k4, (c,), jnp.float32, 0.5, 1.5))   # running_var

    p = {}
    p["conv1_w"] = jax.random.normal(ks[0], (planes, inplanes, 1, 1), jnp.float32) * 0.2
    p["conv2_w"] = jax.random.normal(ks[1], (planes, planes, 3, 3), jnp.float32) * 0.2
    p["conv3_w"] = jax.random.normal(ks[2], (planes * expansion, planes, 1, 1),
                                     jnp.float32) * 0.2
    p["bn1_gamma"], p["bn1_beta"], p["bn1_mean"], p["bn1_var"] = bn_p(ks[3], planes)
    p["bn2_gamma"], p["bn2_beta"], p["bn2_mean"], p["bn2_var"] = bn_p(ks[4], planes)
    p["bn3_gamma"], p["bn3_beta"], p["bn3_mean"], p["bn3_var"] = bn_p(
        ks[5], planes * expansion)
    return p


if __name__ == "__main__":
    key = jax.random.PRNGKey(0)
    k_x, k_p = jax.random.split(key)

    # downsample is None -> stride=1 and inplanes == planes * 4 (identity residual)
    batch, inplanes, planes, spatial = 2, 16, 4, 16
    stride = 1

    x = jax.random.normal(k_x, (batch, inplanes, spatial, spatial), jnp.float32)
    params = init_params(k_p, inplanes, planes)

    # is_last=True path (returns (out, preact))
    fwd_last = jax.jit(functools.partial(bottleneck_forward, stride=stride, is_last=True))
    out, preact = fwd_last(x, params)
    out = jax.block_until_ready(out)
    preact = jax.block_until_ready(preact)

    # is_last=False path (single output, no preact computed/stored)
    fwd = jax.jit(functools.partial(bottleneck_forward, stride=stride, is_last=False))
    out_only = jax.block_until_ready(fwd(x, params))

    # Precision-matched reference (bf16 MXU operands, f32 accumulation) — tight.
    ref_out_bf16, ref_preact_bf16 = reference_forward(
        x, params, stride=stride, is_last=True, matmul_dtype=jnp.bfloat16)
    # Full-f32 reference — looser tolerance (bf16 operands chosen deliberately).
    ref_out_f32, ref_preact_f32 = reference_forward(
        x, params, stride=stride, is_last=True, matmul_dtype=jnp.float32)

    assert out.shape == ref_out_f32.shape and preact.shape == ref_preact_f32.shape
    assert jnp.allclose(out_only, out, rtol=1e-6, atol=1e-6)
    assert jnp.allclose(out, ref_out_bf16, rtol=2e-2, atol=2e-2)
    assert jnp.allclose(preact, ref_preact_bf16, rtol=2e-2, atol=2e-2)
    assert jnp.allclose(out, ref_out_f32, rtol=1e-1, atol=1e-1)
    assert jnp.allclose(preact, ref_preact_f32, rtol=1e-1, atol=1e-1)

    print("KERNEL_OK")
</pallas_src>

<mosaic_0001>
module attributes {stable_mosaic.version = 11 : i64} {
  func.func @_bottleneck_kernel(%arg0: i32, %arg1: memref<1x16x16x128xf32, #tpu.memory_space<vmem>>, %arg2: memref<128x128xbf16, #tpu.memory_space<vmem>>, %arg3: memref<1x128xf32, #tpu.memory_space<vmem>>, %arg4: memref<1x128xf32, #tpu.memory_space<vmem>>, %arg5: memref<3x384x128xbf16, #tpu.memory_space<vmem>>, %arg6: memref<1x128xf32, #tpu.memory_space<vmem>>, %arg7: memref<1x128xf32, #tpu.memory_space<vmem>>, %arg8: memref<128x128xbf16, #tpu.memory_space<vmem>>, %arg9: memref<1x128xf32, #tpu.memory_space<vmem>>, %arg10: memref<1x128xf32, #tpu.memory_space<vmem>>, %arg11: memref<1x256x128xf32, #tpu.memory_space<vmem>>, %arg12: memref<1x256x128xf32, #tpu.memory_space<vmem>>, %arg13: memref<18x16x384xbf16, #tpu.memory_space<vmem>>, %arg14: memref<256x128xf32, #tpu.memory_space<vmem>>) attributes {dimension_semantics = [#tpu.dimension_semantics<parallel>], iteration_bounds = array<i64: 2>, scalar_prefetch = 0 : i64, scratch_operands = 2 : i64, tpu.core_type = #tpu.core_type<tc>, window_params = [{transform_indices = @transform_0, window_bounds = array<i64: 1, 16, 16, 128>}, {pipeline_mode = #tpu.pipeline_mode<synchronous>, transform_indices = @transform_1, window_bounds = array<i64: 128, 128>}, {pipeline_mode = #tpu.pipeline_mode<synchronous>, transform_indices = @transform_2, window_bounds = array<i64: 1, 128>}, {pipeline_mode = #tpu.pipeline_mode<synchronous>, transform_indices = @transform_3, window_bounds = array<i64: 1, 128>}, {pipeline_mode = #tpu.pipeline_mode<synchronous>, transform_indices = @transform_4, window_bounds = array<i64: 3, 384, 128>}, {pipeline_mode = #tpu.pipeline_mode<synchronous>, transform_indices = @transform_5, window_bounds = array<i64: 1, 128>}, {pipeline_mode = #tpu.pipeline_mode<synchronous>, transform_indices = @transform_6, window_bounds = array<i64: 1, 128>}, {pipeline_mode = #tpu.pipeline_mode<synchronous>, transform_indices = @transform_7, window_bounds = array<i64: 128, 128>}, {pipeline_mode = #tpu.pipeline_mode<synchronous>, transform_indices = @transform_8, window_bounds = array<i64: 1, 128>}, {pipeline_mode = #tpu.pipeline_mode<synchronous>, transform_indices = @transform_9, window_bounds = array<i64: 1, 128>}, {transform_indices = @transform_10, window_bounds = array<i64: 1, 256, 128>}, {transform_indices = @transform_11, window_bounds = array<i64: 1, 256, 128>}]} {
    %c0 = arith.constant 0 : index
    %c0_0 = arith.constant 0 : index
    %c0_1 = arith.constant 0 : index
    %c0_2 = arith.constant 0 : index
    %0 = vector.load %arg1[%c0, %c0_0, %c0_1, %c0_2] : memref<1x16x16x128xf32, #tpu.memory_space<vmem>>, vector<1x16x16x128xf32>
    %1 = vector.shape_cast %0 : vector<1x16x16x128xf32> to vector<16x16x128xf32>
    %2 = vector.shape_cast %1 : vector<16x16x128xf32> to vector<256x128xf32>
    %3 = arith.truncf %2 : vector<256x128xf32> to vector<256x128xbf16>
    %c0_3 = arith.constant 0 : index
    %c0_4 = arith.constant 0 : index
    %4 = vector.load %arg2[%c0_3, %c0_4] : memref<128x128xbf16, #tpu.memory_space<vmem>>, vector<128x128xbf16>
    %cst = arith.constant dense<0.000000e+00> : vector<256x128xf32>
    %5 = tpu.matmul %3, %4, %cst {dimension_numbers = #tpu.dot_dimension_numbers<[1], [0], [0], [1], [0, 0, 1, 1], [], []>} : vector<256x128xbf16>, vector<128x128xbf16>, vector<256x128xf32> -> vector<256x128xf32>
    %c0_5 = arith.constant 0 : index
    %c0_6 = arith.constant 0 : index
    %6 = vector.load %arg3[%c0_5, %c0_6] : memref<1x128xf32, #tpu.memory_space<vmem>>, vector<1x128xf32>
    %7 = vector.broadcast %6 : vector<1x128xf32> to vector<256x128xf32>
    %8 = arith.mulf %5, %7 : vector<256x128xf32>
    %c0_7 = arith.constant 0 : index
    %c0_8 = arith.constant 0 : index
    %9 = vector.load %arg4[%c0_7, %c0_8] : memref<1x128xf32, #tpu.memory_space<vmem>>, vector<1x128xf32>
    %10 = vector.broadcast %9 : vector<1x128xf32> to vector<256x128xf32>
    %11 = arith.addf %8, %10 : vector<256x128xf32>
    %cst_9 = arith.constant 0.000000e+00 : f32
    %12 = vector.broadcast %cst_9 : f32 to vector<256x128xf32>
    %13 = arith.maximumf %11, %12 : vector<256x128xf32>
    %14 = arith.truncf %13 : vector<256x128xf32> to vector<256x128xbf16>
    %15 = vector.shape_cast %14 : vector<256x128xbf16> to vector<16x16x128xbf16>
    %cst_10 = arith.constant 0.000000e+00 : bf16
    %16 = vector.broadcast %cst_10 : bf16 to vector<16x384xbf16>
    %c0_11 = arith.constant 0 : index
    %c0_12 = arith.constant 0 : index
    %c0_13 = arith.constant 0 : index
    %17 = vector.load %arg13[%c0_11, %c0_12, %c0_13] : memref<18x16x384xbf16, #tpu.memory_space<vmem>>, vector<1x16x384xbf16>
    %18 = vector.shape_cast %17 : vector<1x16x384xbf16> to vector<16x384xbf16>
    %19 = vector.shape_cast %16 : vector<16x384xbf16> to vector<1x16x384xbf16>
    tpu.vector_store %arg13[%c0_11, %c0_12, %c0_13], %19 {strides = array<i32>} : memref<18x16x384xbf16, #tpu.memory_space<vmem>>, vector<1x16x384xbf16>,
    %c17 = arith.constant 17 : index
    %c0_14 = arith.constant 0 : index
    %c0_15 = arith.constant 0 : index
    %20 = vector.load %arg13[%c17, %c0_14, %c0_15] : memref<18x16x384xbf16, #tpu.memory_space<vmem>>, vector<1x16x384xbf16>
    %21 = vector.shape_cast %20 : vector<1x16x384xbf16> to vector<16x384xbf16>
    %22 = vector.shape_cast %16 : vector<16x384xbf16> to vector<1x16x384xbf16>
    tpu.vector_store %arg13[%c17, %c0_14, %c0_15], %22 {strides = array<i32>} : memref<18x16x384xbf16, #tpu.memory_space<vmem>>, vector<1x16x384xbf16>,
    %cst_16 = arith.constant 0.000000e+00 : bf16
    %23 = vector.broadcast %cst_16 : bf16 to vector<16x1x128xbf16>
    %24 = vector.extract_strided_slice %15 {offsets = [0, 0, 0], sizes = [16, 15, 128], strides = [1, 1, 1]} : vector<16x16x128xbf16> to vector<16x15x128xbf16>
    %25 = tpu.concatenate %23, %24 in 1 : vector<16x1x128xbf16>, vector<16x15x128xbf16> -> vector<16x16x128xbf16>
    %c1 = arith.constant 1 : index
    %c0_17 = arith.constant 0 : index
    %c0_18 = arith.constant 0 : index
    %26 = vector.load %arg13[%c1, %c0_17, %c0_18] : memref<18x16x384xbf16, #tpu.memory_space<vmem>>, vector<16x16x128xbf16>
    tpu.vector_store %arg13[%c1, %c0_17, %c0_18], %25 {strides = array<i32>} : memref<18x16x384xbf16, #tpu.memory_space<vmem>>, vector<16x16x128xbf16>,
    %c1_19 = arith.constant 1 : index
    %c0_20 = arith.constant 0 : index
    %c128 = arith.constant 128 : index
    %27 = vector.load %arg13[%c1_19, %c0_20, %c128] : memref<18x16x384xbf16, #tpu.memory_space<vmem>>, vector<16x16x128xbf16>
    tpu.vector_store %arg13[%c1_19, %c0_20, %c128], %15 {strides = array<i32>} : memref<18x16x384xbf16, #tpu.memory_space<vmem>>, vector<16x16x128xbf16>,
    %28 = vector.extract_strided_slice %15 {offsets = [0, 1, 0], sizes = [16, 15, 128], strides = [1, 1, 1]} : vector<16x16x128xbf16> to vector<16x15x128xbf16>
    %29 = tpu.concatenate %28, %23 in 1 : vector<16x15x128xbf16>, vector<16x1x128xbf16> -> vector<16x16x128xbf16>
    %c1_21 = arith.constant 1 : index
    %c0_22 = arith.constant 0 : index
    %c256 = arith.constant 256 : index
    %30 = vector.load %arg13[%c1_21, %c0_22, %c256] : memref<18x16x384xbf16, #tpu.memory_space<vmem>>, vector<16x16x128xbf16>
    tpu.vector_store %arg13[%c1_21, %c0_22, %c256], %29 {strides = array<i32>} : memref<18x16x384xbf16, #tpu.memory_space<vmem>>, vector<16x16x128xbf16>,
    %c0_23 = arith.constant 0 : index
    %c0_24 = arith.constant 0 : index
    %c0_25 = arith.constant 0 : index
    %31 = vector.load %arg13[%c0_23, %c0_24, %c0_25] : memref<18x16x384xbf16, #tpu.memory_space<vmem>>, vector<16x16x384xbf16>
    %32 = vector.shape_cast %31 : vector<16x16x384xbf16> to vector<256x384xbf16>
    %c0_26 = arith.constant 0 : index
    %c0_27 = arith.constant 0 : index
    %c0_28 = arith.constant 0 : index
    %33 = vector.load %arg5[%c0_26, %c0_27, %c0_28] : memref<3x384x128xbf16, #tpu.memory_space<vmem>>, vector<1x384x128xbf16>
    %34 = vector.shape_cast %33 : vector<1x384x128xbf16> to vector<384x128xbf16>
    %cst_29 = arith.constant dense<0.000000e+00> : vector<256x128xf32>
    %35 = tpu.matmul %32, %34, %cst_29 {dimension_numbers = #tpu.dot_dimension_numbers<[1], [0], [0], [1], [0, 0, 1, 1], [], []>} : vector<256x384xbf16>, vector<384x128xbf16>, vector<256x128xf32> -> vector<256x128xf32>
    %c0_30 = arith.constant 0 : index
    %c0_31 = arith.constant 0 : index
    %36 = vector.load %arg14[%c0_30, %c0_31] : memref<256x128xf32, #tpu.memory_space<vmem>>, vector<256x128xf32>
    tpu.vector_store %arg14[%c0_30, %c0_31], %35 {strides = array<i32>} : memref<256x128xf32, #tpu.memory_space<vmem>>, vector<256x128xf32>,
    %c0_32 = arith.constant 0 : index
    %c0_33 = arith.constant 0 : index
    %37 = vector.load %arg14[%c0_32, %c0_33] : memref<256x128xf32, #tpu.memory_space<vmem>>, vector<256x128xf32>
    %c1_34 = arith.constant 1 : index
    %c0_35 = arith.constant 0 : index
    %c0_36 = arith.constant 0 : index
    %38 = vector.load %arg13[%c1_34, %c0_35, %c0_36] : memref<18x16x384xbf16, #tpu.memory_space<vmem>>, vector<16x16x384xbf16>
    %39 = vector.shape_cast %38 : vector<16x16x384xbf16> to vector<256x384xbf16>
    %c1_37 = arith.constant 1 : index
    %c0_38 = arith.constant 0 : index
    %c0_39 = arith.constant 0 : index
    %40 = vector.load %arg5[%c1_37, %c0_38, %c0_39] : memref<3x384x128xbf16, #tpu.memory_space<vmem>>, vector<1x384x128xbf16>
    %41 = vector.shape_cast %40 : vector<1x384x128xbf16> to vector<384x128xbf16>
    %cst_40 = arith.constant dense<0.000000e+00> : vector<256x128xf32>
    %42 = tpu.matmul %39, %41, %cst_40 {dimension_numbers = #tpu.dot_dimension_numbers<[1], [0], [0], [1], [0, 0, 1, 1], [], []>} : vector<256x384xbf16>, vector<384x128xbf16>, vector<256x128xf32> -> vector<256x128xf32>
    %43 = arith.addf %37, %42 : vector<256x128xf32>
    %c0_41 = arith.constant 0 : index
    %c0_42 = arith.constant 0 : index
    %44 = vector.load %arg14[%c0_41, %c0_42] : memref<256x128xf32, #tpu.memory_space<vmem>>, vector<256x128xf32>
    tpu.vector_store %arg14[%c0_41, %c0_42], %43 {strides = array<i32>} : memref<256x128xf32, #tpu.memory_space<vmem>>, vector<256x128xf32>,
    %c0_43 = arith.constant 0 : index
    %c0_44 = arith.constant 0 : index
    %45 = vector.load %arg14[%c0_43, %c0_44] : memref<256x128xf32, #tpu.memory_space<vmem>>, vector<256x128xf32>
    %c2 = arith.constant 2 : index
    %c0_45 = arith.constant 0 : index
    %c0_46 = arith.constant 0 : index
    %46 = vector.load %arg13[%c2, %c0_45, %c0_46] : memref<18x16x384xbf16, #tpu.memory_space<vmem>>, vector<16x16x384xbf16>
    %47 = vector.shape_cast %46 : vector<16x16x384xbf16> to vector<256x384xbf16>
    %c2_47 = arith.constant 2 : index
    %c0_48 = arith.constant 0 : index
    %c0_49 = arith.constant 0 : index
    %48 = vector.load %arg5[%c2_47, %c0_48, %c0_49] : memref<3x384x128xbf16, #tpu.memory_space<vmem>>, vector<1x384x128xbf16>
    %49 = vector.shape_cast %48 : vector<1x384x128xbf16> to vector<384x128xbf16>
    %cst_50 = arith.constant dense<0.000000e+00> : vector<256x128xf32>
    %50 = tpu.matmul %47, %49, %cst_50 {dimension_numbers = #tpu.dot_dimension_numbers<[1], [0], [0], [1], [0, 0, 1, 1], [], []>} : vector<256x384xbf16>, vector<384x128xbf16>, vector<256x128xf32> -> vector<256x128xf32>
    %51 = arith.addf %45, %50 : vector<256x128xf32>
    %c0_51 = arith.constant 0 : index
    %c0_52 = arith.constant 0 : index
    %52 = vector.load %arg14[%c0_51, %c0_52] : memref<256x128xf32, #tpu.memory_space<vmem>>, vector<256x128xf32>
    tpu.vector_store %arg14[%c0_51, %c0_52], %51 {strides = array<i32>} : memref<256x128xf32, #tpu.memory_space<vmem>>, vector<256x128xf32>,
    %c0_53 = arith.constant 0 : index
    %c0_54 = arith.constant 0 : index
    %53 = vector.load %arg14[%c0_53, %c0_54] : memref<256x128xf32, #tpu.memory_space<vmem>>, vector<256x128xf32>
    %c0_55 = arith.constant 0 : index
    %c0_56 = arith.constant 0 : index
    %54 = vector.load %arg6[%c0_55, %c0_56] : memref<1x128xf32, #tpu.memory_space<vmem>>, vector<1x128xf32>
    %55 = vector.broadcast %54 : vector<1x128xf32> to vector<256x128xf32>
    %56 = arith.mulf %53, %55 : vector<256x128xf32>
    %c0_57 = arith.constant 0 : index
    %c0_58 = arith.constant 0 : index
    %57 = vector.load %arg7[%c0_57, %c0_58] : memref<1x128xf32, #tpu.memory_space<vmem>>, vector<1x128xf32>
    %58 = vector.broadcast %57 : vector<1x128xf32> to vector<256x128xf32>
    %59 = arith.addf %56, %58 : vector<256x128xf32>
    %cst_59 = arith.constant 0.000000e+00 : f32
    %60 = vector.broadcast %cst_59 : f32 to vector<256x128xf32>
    %61 = arith.maximumf %59, %60 : vector<256x128xf32>
    %62 = arith.truncf %61 : vector<256x128xf32> to vector<256x128xbf16>
    %c0_60 = arith.constant 0 : index
    %c0_61 = arith.constant 0 : index
    %63 = vector.load %arg8[%c0_60, %c0_61] : memref<128x128xbf16, #tpu.memory_space<vmem>>, vector<128x128xbf16>
    %cst_62 = arith.constant dense<0.000000e+00> : vector<256x128xf32>
    %64 = tpu.matmul %62, %63, %cst_62 {dimension_numbers = #tpu.dot_dimension_numbers<[1], [0], [0], [1], [0, 0, 1, 1], [], []>} : vector<256x128xbf16>, vector<128x128xbf16>, vector<256x128xf32> -> vector<256x128xf32>
    %c0_63 = arith.constant 0 : index
    %c0_64 = arith.constant 0 : index
    %65 = vector.load %arg9[%c0_63, %c0_64] : memref<1x128xf32, #tpu.memory_space<vmem>>, vector<1x128xf32>
    %66 = vector.broadcast %65 : vector<1x128xf32> to vector<256x128xf32>
    %67 = arith.mulf %64, %66 : vector<256x128xf32>
    %c0_65 = arith.constant 0 : index
    %c0_66 = arith.constant 0 : index
    %68 = vector.load %arg10[%c0_65, %c0_66] : memref<1x128xf32, #tpu.memory_space<vmem>>, vector<1x128xf32>
    %69 = vector.broadcast %68 : vector<1x128xf32> to vector<256x128xf32>
    %70 = arith.addf %67, %69 : vector<256x128xf32>
    %c0_67 = arith.constant 0 : index
    %c0_68 = arith.constant 0 : index
    %c0_69 = arith.constant 0 : index
    %c0_70 = arith.constant 0 : index
    %71 = vector.load %arg1[%c0_67, %c0_68, %c0_69, %c0_70] : memref<1x16x16x128xf32, #tpu.memory_space<vmem>>, vector<1x16x16x128xf32>
    %72 = vector.shape_cast %71 : vector<1x16x16x128xf32> to vector<16x16x128xf32>
    %73 = vector.shape_cast %72 : vector<16x16x128xf32> to vector<256x128xf32>
    %74 = arith.addf %70, %73 : vector<256x128xf32>
    %c0_71 = arith.constant 0 : index
    %c0_72 = arith.constant 0 : index
    %c0_73 = arith.constant 0 : index
    %75 = vector.load %arg12[%c0_71, %c0_72, %c0_73] : memref<1x256x128xf32, #tpu.memory_space<vmem>>, vector<1x256x128xf32>
    %76 = vector.shape_cast %75 : vector<1x256x128xf32> to vector<256x128xf32>
    %77 = vector.shape_cast %74 : vector<256x128xf32> to vector<1x256x128xf32>
    tpu.vector_store %arg12[%c0_71, %c0_72, %c0_73], %77 {strides = array<i32>} : memref<1x256x128xf32, #tpu.memory_space<vmem>>, vector<1x256x128xf32>,
    %cst_74 = arith.constant 0.000000e+00 : f32
    %78 = vector.broadcast %cst_74 : f32 to vector<256x128xf32>
    %79 = arith.maximumf %74, %78 : vector<256x128xf32>
    %c0_75 = arith.constant 0 : index
    %c0_76 = arith.constant 0 : index
    %c0_77 = arith.constant 0 : index
    %80 = vector.load %arg11[%c0_75, %c0_76, %c0_77] : memref<1x256x128xf32, #tpu.memory_space<vmem>>, vector<1x256x128xf32>
    %81 = vector.shape_cast %80 : vector<1x256x128xf32> to vector<256x128xf32>
    %82 = vector.shape_cast %79 : vector<256x128xf32> to vector<1x256x128xf32>
    tpu.vector_store %arg11[%c0_75, %c0_76, %c0_77], %82 {strides = array<i32>} : memref<1x256x128xf32, #tpu.memory_space<vmem>>, vector<1x256x128xf32>,
    return
  }
  func.func @transform_0(%arg0: i32) -> (i32, i32, i32, i32) {
    %c0_i32 = arith.constant 0 : i32
    %c0_i32_0 = arith.constant 0 : i32
    %c0_i32_1 = arith.constant 0 : i32
    %c0_i32_2 = arith.constant 0 : i32
    return %arg0, %c0_i32, %c0_i32_0, %c0_i32_1 : i32, i32, i32, i32
  }
  func.func @transform_1(%arg0: i32) -> (i32, i32) {
    %c0_i32 = arith.constant 0 : i32
    %c0_i32_0 = arith.constant 0 : i32
    %c0_i32_1 = arith.constant 0 : i32
    return %c0_i32, %c0_i32_0 : i32, i32
  }
  func.func @transform_2(%arg0: i32) -> (i32, i32) {
    %c0_i32 = arith.constant 0 : i32
    %c0_i32_0 = arith.constant 0 : i32
    %c0_i32_1 = arith.constant 0 : i32
    return %c0_i32, %c0_i32_0 : i32, i32
  }
  func.func @transform_3(%arg0: i32) -> (i32, i32) {
    %c0_i32 = arith.constant 0 : i32
    %c0_i32_0 = arith.constant 0 : i32
    %c0_i32_1 = arith.constant 0 : i32
    return %c0_i32, %c0_i32_0 : i32, i32
  }
  func.func @transform_4(%arg0: i32) -> (i32, i32, i32) {
    %c0_i32 = arith.constant 0 : i32
    %c0_i32_0 = arith.constant 0 : i32
    %c0_i32_1 = arith.constant 0 : i32
    %c0_i32_2 = arith.constant 0 : i32
    return %c0_i32, %c0_i32_0, %c0_i32_1 : i32, i32, i32
  }
  func.func @transform_5(%arg0: i32) -> (i32, i32) {
    %c0_i32 = arith.constant 0 : i32
    %c0_i32_0 = arith.constant 0 : i32
    %c0_i32_1 = arith.constant 0 : i32
    return %c0_i32, %c0_i32_0 : i32, i32
  }
  func.func @transform_6(%arg0: i32) -> (i32, i32) {
    %c0_i32 = arith.constant 0 : i32
    %c0_i32_0 = arith.constant 0 : i32
    %c0_i32_1 = arith.constant 0 : i32
    return %c0_i32, %c0_i32_0 : i32, i32
  }
  func.func @transform_7(%arg0: i32) -> (i32, i32) {
    %c0_i32 = arith.constant 0 : i32
    %c0_i32_0 = arith.constant 0 : i32
    %c0_i32_1 = arith.constant 0 : i32
    return %c0_i32, %c0_i32_0 : i32, i32
  }
  func.func @transform_8(%arg0: i32) -> (i32, i32) {
    %c0_i32 = arith.constant 0 : i32
    %c0_i32_0 = arith.constant 0 : i32
    %c0_i32_1 = arith.constant 0 : i32
    return %c0_i32, %c0_i32_0 : i32, i32
  }
  func.func @transform_9(%arg0: i32) -> (i32, i32) {
    %c0_i32 = arith.constant 0 : i32
    %c0_i32_0 = arith.constant 0 : i32
    %c0_i32_1 = arith.constant 0 : i32
    return %c0_i32, %c0_i32_0 : i32, i32
  }
  func.func @transform_10(%arg0: i32) -> (i32, i32, i32) {
    %c0_i32 = arith.constant 0 : i32
    %c0_i32_0 = arith.constant 0 : i32
    %c0_i32_1 = arith.constant 0 : i32
    return %arg0, %c0_i32, %c0_i32_0 : i32, i32, i32
  }
  func.func @transform_11(%arg0: i32) -> (i32, i32, i32) {
    %c0_i32 = arith.constant 0 : i32
    %c0_i32_0 = arith.constant 0 : i32
    %c0_i32_1 = arith.constant 0 : i32
    return %arg0, %c0_i32, %c0_i32_0 : i32, i32, i32
  }
}

</mosaic_0001>

<bundles_post_ra>
// kernel: bottleneck_forward.1
= control target key start
LH: loop header
LB: loop body
LE: loop exit
PB: predicated region body
PF: predicated region fallthrough
CT: control target
= control target key end

     0   :  { %s4936_s17 = smov 0   ;;  %s6349_s0 = inlined_call_operand.vmem [shape: f32[2,16,16,128], index: 0, kind: input, shape index: {}]   ;;  %s6350_s1 = inlined_call_operand.vmem [shape: bf16[128,128], index: 1, kind: input, shape index: {}]   ;;  %s6351_s2 = inlined_call_operand.vmem [shape: f32[1,128], index: 2, kind: input, shape index: {}]   ;;  %s6352_s3 = inlined_call_operand.vmem [shape: f32[1,128], index: 3, kind: input, shape index: {}]   ;;  %s6353_s4 = inlined_call_operand.vmem [shape: bf16[3,384,128], index: 4, kind: input, shape index: {}]   ;;  %s6354_s5 = inlined_call_operand.vmem [shape: f32[1,128], index: 5, kind: input, shape index: {}]   ;;  %s6355_s6 = inlined_call_operand.vmem [shape: f32[1,128], index: 6, kind: input, shape index: {}]   ;;  %s6356_s7 = inlined_call_operand.vmem [shape: bf16[128,128], index: 7, kind: input, shape index: {}]   ;;  %s6357_s8 = inlined_call_operand.vmem [shape: f32[1,128], index: 8, kind: input, shape index: {}]   ;;  %s6358_s9 = inlined_call_operand.vmem [shape: f32[1,128], index: 9, kind: input, shape index: {}]   ;;  %s6359_s10 = inlined_call_operand.vmem [shape: f32[2,256,128], index: 10, kind: output, shape index: {0}]   ;;  %s6360_s11 = inlined_call_operand.vmem [shape: f32[2,256,128], index: 11, kind: output, shape index: {1}]  }
   0x1 LB: > { %s3692_s18 = sadd.s32 4294967295, %s4873_s17   ;;  %p3696_p0 = scmp.ge.s32.totalorder %s4873_s17, 1  ;;  %s4873_s17 = sphi %s4936_s17, %s22_s17  }
   0x2   : > { %p340_p1 = scmp.lt.s32.totalorder %s4873_s17, 3 }
   0x4   : > { %p341_p2 = pnand %p3696_p0, %p340_p1 }
   0x5   : > { %v4779_v0 = vld [vmem:[%s6350_s1] sm:$0xff] (!%p341_p2)   ;;  %p385_p3 = scmp.lt.s32.totalorder (!%p341_p2), %s3692_s18, 1  ;;  %v4780_v1 = vld [vmem:[%s6350_s1 + $0x8] sm:$0xff] (!%p341_p2)   ;;  %v4781_v2 = vld [vmem:[%s6350_s1 + $0x10] sm:$0xff] (!%p341_p2)   ;;  %vm935_vm0 = vcmask (!%p341_p2), 1040384   ;;  %vm1035_vm2 = vcmask (!%p341_p2), 1047552  }
   0x6   : > { %344 = sbr.rel (%p341_p2) target bundleno = 1030 (0x406), region = 60  ;;  %4354 = vmatprep.subr.bf16.mxu0 (!%p341_p2), %v4779_v0  ;;  %4594 = vmatprep.subr.bf16.mxu1 (!%p341_p2), %v4779_v0  ;;  %v4782_v3 = vld [vmem:[%s6350_s1 + $0x18] sm:$0xff] (!%p341_p2)   ;;  %v4783_v7 = vld [vmem:[%s6350_s1 + $0x20] sm:$0xff] (!%p341_p2)   ;;  %v4784_v11 = vld [vmem:[%s6350_s1 + $0x28] sm:$0xff] (!%p341_p2)   ;;  %vm936_vm1 = vsmask.f32 (!%p341_p2), 256 }
   0x7   : > { %4355 = vmatpush3.bf16.msra.mxu0 (!%p341_p2), %v4779_v0  ;;  %4602 = vmatpush3.bf16.msra.mxu1 (!%p341_p2), %v4779_v0  ;;  %v4785_v12 = vld [vmem:[%s6350_s1 + $0x30] sm:$0xff] (!%p341_p2)   ;;  %v4786_v13 = vld [vmem:[%s6350_s1 + $0x38] sm:$0xff] (!%p341_p2)   ;;  %v4791_v22 = vld [vmem:[%s6353_s4 + $0x80] sm:$0xff] (!%p341_p2)   ;;  %vm1036_vm3 = vsmask.f32 (!%p341_p2), 7424 }
   0x8   : > { %4356 = vmatprep.subr.bf16.mxu0 (!%p341_p2), %v4780_v1  ;;  %4595 = vmatprep.subr.bf16.mxu1 (!%p341_p2), %v4780_v1  ;;  %v4787_v23 = vld [vmem:[%s6353_s4 + $0x40] sm:$0xff] (!%p341_p2)   ;;  %v4789_v29 = vld [vmem:[%s6353_s4 + $0x48] sm:$0xff] (!%p341_p2)   ;;  %v4792_v40 = vld [vmem:[%s6353_s4 + $0x50] sm:$0xff] (!%p341_p2)  }
   0x9   : > { %v4788_v27 = vld [vmem:[%s6353_s4] sm:$0xff] (!%p341_p2)   ;;  %v4794_v32 = vld [vmem:[%s6353_s4 + $0x88] sm:$0xff] (!%p341_p2)   ;;  %v4797_v41 = vld [vmem:[%s6353_s4 + $0x90] sm:$0xff] (!%p341_p2)  }
   0xa   : > { %v4790_v37 = vld [vmem:[%s6353_s4 + $0x8] sm:$0xff] (!%p341_p2)   ;;  %v4793_v43 = vld [vmem:[%s6353_s4 + $0x10] sm:$0xff] (!%p341_p2)   ;;  %v4795_v46 = vld [vmem:[%s6353_s4 + $0x58] sm:$0xff] (!%p341_p2)  }
   0xb   : > { %4357 = vmatpush3.bf16.msra.mxu0 (!%p341_p2), %v4780_v1  ;;  %4603 = vmatpush3.bf16.msra.mxu1 (!%p341_p2), %v4780_v1  ;;  %v4800_v48 = vld [vmem:[%s6353_s4 + $0x98] sm:$0xff] (!%p341_p2)   ;;  %v4798_v58 = vld [vmem:[%s6353_s4 + $0x60] sm:$0xff] (!%p341_p2)   ;;  %v4801_v63 = vld [vmem:[%s6353_s4 + $0x68] sm:$0xff] (!%p341_p2)  }
   0xc   : > { %4358 = vmatprep.subr.bf16.mxu0 (!%p341_p2), %v4781_v2  ;;  %4596 = vmatprep.subr.bf16.mxu1 (!%p341_p2), %v4781_v2  ;;  %v4796_v55 = vld [vmem:[%s6353_s4 + $0x18] sm:$0xff] (!%p341_p2)   ;;  %v4799_v60 = vld [vmem:[%s6353_s4 + $0x20] sm:$0xff] (!%p341_p2)   ;;  %vm5188_vm4 = vmand (!%p341_p2), %vm1035_vm2, %vm1036_vm3 }
   0xd   : > { %s6375_s18 = smov (!%p385_p3, %s3692_s18), 1  ;;  %vm5194_vm5 = vmand %vm935_vm0, %vm936_vm1 }
   0xe   : > { %s4953_s25 = sshll.u32 %s6375_s18, 8 }
   0xf   : > { %s4959_s28 = scalar_lea.vmem %s6349_s0, %s4953_s25  ;;  %4359 = vmatpush3.bf16.msra.mxu0 %v4781_v2  ;;  %4604 = vmatpush3.bf16.msra.mxu1 %v4781_v2  ;;  %s6184_s19 = scalar_lea.vmem %s6360_s11, %s4953_s25 }
  0x10   : > { %v401_v4 = vld [vmem:[%s4959_s28] sm:$0xff]  ;;  %v402_v5 = vld [vmem:[%s4959_s28 + $0x8] sm:$0xff]  ;;  %4360 = vmatprep.subr.bf16.mxu0 %v4782_v3  ;;  %4597 = vmatprep.subr.bf16.mxu1 %v4782_v3  ;;  %v403_v14 = vld [vmem:[%s4959_s28 + $0x10] sm:$0xff]  ;;  %s6195_s22 = scalar_lea.vmem %s6359_s10, %s4953_s25 }
  0x11   : > { %v433_v6 = vpack.c.bf16 %v402_v5, %v401_v4  ;;  %v417_v8 = vld [vmem:[%s4959_s28 + $0x80] sm:$0xff]  ;;  %v418_v9 = vld [vmem:[%s4959_s28 + $0x88] sm:$0xff]  ;;  %v404_v15 = vld [vmem:[%s4959_s28 + $0x18] sm:$0xff] }
  0x12   : > { %v441_v10 = vpack.c.bf16 %v418_v9, %v417_v8  ;;  %v405_v16 = vld [vmem:[%s4959_s28 + $0x20] sm:$0xff]  ;;  %v406_v17 = vld [vmem:[%s4959_s28 + $0x28] sm:$0xff]  ;;  %v419_v18 = vld [vmem:[%s4959_s28 + $0x90] sm:$0xff]  ;;  %v434_v24 = vpack.c.bf16 %v404_v15, %v403_v14  ;;  %v6361_v15 = vmov 0  }
  0x13   : > { %4370 = vmatprep.mubr.bf16.mxu0 %v433_v6  ;;  %4361 = vmatpush3.bf16.msra.mxu0 %v4782_v3  ;;  %v420_v19 = vld [vmem:[%s4959_s28 + $0x98] sm:$0xff]  ;;  %v421_v20 = vld [vmem:[%s4959_s28 + $0xa0] sm:$0xff]  ;;  %v422_v21 = vld [vmem:[%s4959_s28 + $0xa8] sm:$0xff]  ;;  %v435_v25 = vpack.c.bf16 %v406_v17, %v405_v16 }
  0x14   : > { %4362 = vmatprep.subr.bf16.mxu0 %v4783_v7  ;;  %4605 = vmatpush3.bf16.msra.mxu1 %v4782_v3  ;;  %v442_v26 = vpack.c.bf16 %v420_v19, %v419_v18  ;;  %v443_v28 = vpack.c.bf16 %v422_v21, %v421_v20  ;;  %v407_v30 = vld [vmem:[%s4959_s28 + $0x30] sm:$0xff]  ;;  %v408_v31 = vld [vmem:[%s4959_s28 + $0x38] sm:$0xff]  ;;  %v409_v33 = vld [vmem:[%s4959_s28 + $0x40] sm:$0xff] }
  0x15   : > { %4598 = vmatprep.subr.bf16.mxu1 %v4783_v7  ;;  %4386 = vmatprep.mubr.bf16.mxu1 %v441_v10  ;;  %v410_v34 = vld [vmem:[%s4959_s28 + $0x48] sm:$0xff]  ;;  %v423_v35 = vld [vmem:[%s4959_s28 + $0xb0] sm:$0xff]  ;;  %v424_v36 = vld [vmem:[%s4959_s28 + $0xb8] sm:$0xff]  ;;  %v436_v42 = vpack.c.bf16 %v408_v31, %v407_v30 }
  0x16   : > { %v425_v38 = vld [vmem:[%s4959_s28 + $0xc0] sm:$0xff]  ;;  %v426_v39 = vld [vmem:[%s4959_s28 + $0xc8] sm:$0xff]  ;;  %v437_v44 = vpack.c.bf16 %v410_v34, %v409_v33  ;;  %v444_v45 = vpack.c.bf16 %v424_v36, %v423_v35  ;;  %v411_v49 = vld [vmem:[%s4959_s28 + $0x50] sm:$0xff] }
  0x17   : > { %4363 = vmatpush3.bf16.msra.mxu0 %v4783_v7  ;;  %v445_v47 = vpack.c.bf16 %v426_v39, %v425_v38  ;;  %v412_v50 = vld [vmem:[%s4959_s28 + $0x58] sm:$0xff]  ;;  %v413_v51 = vld [vmem:[%s4959_s28 + $0x60] sm:$0xff]  ;;  %v414_v52 = vld [vmem:[%s4959_s28 + $0x68] sm:$0xff] }
  0x18   : > { %4364 = vmatprep.subr.bf16.mxu0 %v4784_v11  ;;  %4606 = vmatpush3.bf16.msra.mxu1 %v4783_v7  ;;  %v427_v53 = vld [vmem:[%s4959_s28 + $0xd0] sm:$0xff]  ;;  %v428_v54 = vld [vmem:[%s4959_s28 + $0xd8] sm:$0xff]  ;;  %v429_v56 = vld [vmem:[%s4959_s28 + $0xe0] sm:$0xff]  ;;  %v438_v59 = vpack.c.bf16 %v412_v50, %v411_v49  ;;  %v439_v61 = vpack.c.bf16 %v414_v52, %v413_v51 }
  0x19   : > { %4599 = vmatprep.subr.bf16.mxu1 %v4784_v11  ;;  %v430_v57 = vld [vmem:[%s4959_s28 + $0xe8] sm:$0xff]  ;;  %v446_v62 = vpack.c.bf16 %v428_v54, %v427_v53  ;;  %v415_v1 = vld [vmem:[%s4959_s28 + $0x70] sm:$0xff]  ;;  %v416_v2 = vld [vmem:[%s4959_s28 + $0x78] sm:$0xff] }
  0x1a   : > { %v447_v0 = vpack.c.bf16 %v430_v57, %v429_v56  ;;  %v431_v3 = vld [vmem:[%s4959_s28 + $0xf0] sm:$0xff]  ;;  %v432_v4 = vld [vmem:[%s4959_s28 + $0xf8] sm:$0xff]  ;;  %v440_v5 = vpack.c.bf16 %v416_v2, %v415_v1  ;;  %v4802_v7 = vld [vmem:[%s6353_s4 + $0x28] sm:$0xff]  }
  0x1b   : > { %4365 = vmatpush3.bf16.msra.mxu0 %v4784_v11  ;;  %v448_v6 = vpack.c.bf16 %v432_v4, %v431_v3  ;;  %v4803_v8 = vld [vmem:[%s6353_s4 + $0xa0] sm:$0xff]   ;;  %v4804_v9 = vld [vmem:[%s6353_s4 + $0x70] sm:$0xff]   ;;  %v4810_v16 = vld [vmem:[%s6353_s4 + $0xb8] sm:$0xff]  }
  0x1c   : > { %4366 = vmatprep.subr.bf16.mxu0 %v4785_v12  ;;  %4607 = vmatpush3.bf16.msra.mxu1 %v4784_v11  ;;  %v4805_v10 = vld [vmem:[%s6353_s4 + $0x30] sm:$0xff]   ;;  %v4806_v11 = vld [vmem:[%s6353_s4 + $0xa8] sm:$0xff]   ;;  %v4811_v17 = vld [vmem:[%s6353_s4 + $0x100] sm:$0xff]  }
  0x1d   : > { %4600 = vmatprep.subr.bf16.mxu1 %v4785_v12  ;;  %v4809_v14 = vld [vmem:[%s6353_s4 + $0xb0] sm:$0xff]   ;;  %v4827_v18 = vld [vmem:[%s6353_s4 + $0x1c0] sm:$0xff]   ;;  %v4830_v20 = vld [vmem:[%s6353_s4 + $0x1c8] sm:$0xff]  }
  0x1e   : > { %v4828_v19 = vld [vmem:[%s6353_s4 + $0x180] sm:$0xff]   ;;  %v4831_v21 = vld [vmem:[%s6353_s4 + $0x188] sm:$0xff]   ;;  %v4844_v51 = vld [vmem:[%s6353_s4 + $0x1b0] sm:$0xff]  }
  0x1f   : > { %4367 = vmatpush3.bf16.msra.mxu0 %v4785_v12  ;;  %v4841_v30 = vld [vmem:[%s6353_s4 + $0x1a8] sm:$0xff]   ;;  %v4845_v52 = vld [vmem:[%s6353_s4 + $0x1f8] sm:$0xff]  }
  0x20   : > { %4368 = vmatprep.subr.bf16.mxu0 %v4786_v13  ;;  %4608 = vmatpush3.bf16.msra.mxu1 %v4785_v12  ;;  %v4807_v12 = vld [vmem:[%s6353_s4 + $0x78] sm:$0xff]  }
  0x21   : > { %4601 = vmatprep.subr.bf16.mxu1 %v4786_v13 }
  0x23   : > { %4369 = vmatpush3.bf16.msra.mxu0 %v4786_v13 }
  0x24   : > { %4609 = vmatpush3.bf16.msra.mxu1 %v4786_v13  ;;  %4402 = vmatprep.subr.bf16.mxu0 %v4791_v22  ;;  %v4808_v13 = vld [vmem:[%s6353_s4 + $0x38] sm:$0xff]  }
  0x25   : > { %3922 = vmatprep.subr.bf16.mxu1 %v4787_v23  ;;  %v4834_v23 = vld [vmem:[%s6353_s4 + $0x190] sm:$0xff]  }
  0x26   : > { %4371 = vmatmul.mubr.bf16.vlgmr.msra.gmra.mrb[0].mxu0 %v434_v24  ;;  %v4836_v24 = vld [vmem:[%s6353_s4 + $0x1d8] sm:$0xff]  }
  0x27   : > { %4374 = vmatprep.mubr.bf16.mxu0 %v435_v25  ;;  %4387 = vmatmul.mubr.bf16.vlgmr.msra.gmra.mrb[0].mxu1 %v442_v26  ;;  %v4837_v25 = vld [vmem:[%s6353_s4 + $0x198] sm:$0xff]   ;;  %v4838_v26 = vld [vmem:[%s6353_s4 + $0x1e0] sm:$0xff]  }
  0x28   : > { %4390 = vmatprep.mubr.bf16.mxu1 %v443_v28  ;;  %3923 = vmatpush3.bf16.msra.mxu1 %v4788_v27  ;;  %v4839_v27 = vld [vmem:[%s6353_s4 + $0x1a0] sm:$0xff]   ;;  %v4840_v28 = vld [vmem:[%s6353_s4 + $0x1e8] sm:$0xff]  }
  0x29   : > { %3924 = vmatprep.subr.bf16.mxu1 %v4789_v29  ;;  %4403 = vmatpush3.bf16.msra.mxu0 %v4791_v22  ;;  %v4833_v22 = vld [vmem:[%s6353_s4 + $0x1d0] sm:$0xff]   ;;  %v5122_v29 = vld [vmem:[%s6351_s2] ss:$0 sm:$0xff] }
  0x2a   : > { %4404 = vmatprep.subr.bf16.mxu0 %v4794_v32 }
  0x2c   : > { %3925 = vmatpush3.bf16.msra.mxu1 %v4790_v37 }
  0x2d   : > { %3926 = vmatprep.subr.bf16.mxu1 %v4792_v40  ;;  %4405 = vmatpush3.bf16.msra.mxu0 %v4794_v32  ;;  %v5130_v32 = vld [vmem:[%s6352_s3] ss:$0 sm:$0xff] }
  0x2e   : > { %4375 = vmatmul.mubr.bf16.gmra.mrb[4].mxu0 %v436_v42  ;;  %4406 = vmatprep.subr.bf16.mxu0 %v4797_v41 }
  0x2f   : > { %4378 = vmatprep.mubr.bf16.mxu0 %v437_v44  ;;  %4391 = vmatmul.mubr.bf16.gmra.mrb[4].mxu1 %v444_v45  ;;  %v4843_v45 = vld [vmem:[%s6353_s4 + $0x1f0] sm:$0xff]  }
  0x30   : > { %4394 = vmatprep.mubr.bf16.mxu1 %v445_v47  ;;  %3927 = vmatpush3.bf16.msra.mxu1 %v4793_v43 }
  0x31   : > { %3928 = vmatprep.subr.bf16.mxu1 %v4795_v46  ;;  %4407 = vmatpush3.bf16.msra.mxu0 %v4797_v41 }
  0x32   : > { %4408 = vmatprep.subr.bf16.mxu0 %v4800_v48 }
  0x34   : > { %3929 = vmatpush3.bf16.msra.mxu1 %v4796_v55 }
  0x35   : > { %3930 = vmatprep.subr.bf16.mxu1 %v4798_v58  ;;  %4409 = vmatpush3.bf16.msra.mxu0 %v4800_v48 }
  0x36   : > { %4379 = vmatmul.mubr.bf16.gmra.mrb[8].mxu0 %v438_v59  ;;  %4410 = vmatprep.subr.bf16.mxu0 %v4803_v8  ;;  %v4846_v59 = vld [vmem:[%s6353_s4 + $0x1b8] sm:$0xff]  }
  0x37   : > { %4382 = vmatprep.mubr.bf16.mxu0 %v439_v61  ;;  %4395 = vmatmul.mubr.bf16.gmra.mrb[8].mxu1 %v446_v62 }
  0x38   : > { %4398 = vmatprep.mubr.bf16.mxu1 %v447_v0  ;;  %3931 = vmatpush3.bf16.msra.mxu1 %v4799_v60 }
  0x39   : > { %3932 = vmatprep.subr.bf16.mxu1 %v4801_v63  ;;  %4411 = vmatpush3.bf16.msra.mxu0 %v4803_v8 }
  0x3a   : > { %4412 = vmatprep.subr.bf16.mxu0 %v4806_v11 }
  0x3c   : > { %3933 = vmatpush3.bf16.msra.mxu1 %v4802_v7 }
  0x3d   : > { %3934 = vmatprep.subr.bf16.mxu1 %v4804_v9  ;;  %4413 = vmatpush3.bf16.msra.mxu0 %v4806_v11 }
  0x3e   : > { %4383 = vmatmul.mubr.bf16.gmra.mrb[12].mxu0 %v440_v5  ;;  %4414 = vmatprep.subr.bf16.mxu0 %v4809_v14 }
  0x3f   : > { %4399 = vmatmul.mubr.bf16.gmra.mrb[12].mxu1 %v448_v6  ;;  %4418 = vmatprep.mubr.bf16.mxu0 %v6361_v15 }
  0x40   : > { %3935 = vmatpush3.bf16.msra.mxu1 %v4805_v10  ;;  %1342 = vmatprep.mubr.bf16.mxu1 %v6361_v15 }
  0x41   : > { %3936 = vmatprep.subr.bf16.mxu1 %v4807_v12  ;;  %4415 = vmatpush3.bf16.msra.mxu0 %v4809_v14 }
  0x42   : > { %4416 = vmatprep.subr.bf16.mxu0 %v4810_v16 }
  0x44   : > { %3937 = vmatpush3.bf16.msra.mxu1 %v4808_v13 }
  0x45   : > { %4417 = vmatpush3.bf16.msra.mxu0 %v4810_v16  ;;  %4194 = vmatprep.subr.bf16.mxu1 %v4827_v18 }
  0x46   : > { %4058 = vmatprep.subr.bf16.mxu0 %v4811_v17 }
  0x47   : > { %1343 = vmatmul.mubr.bf16.vlgmr.msra.gmra.mrb[16].mxu1 %v6361_v15 }
  0x48   : > { %4195 = vmatpush3.bf16.msra.mxu1 %v4828_v19 }
  0x49   : > { %4196 = vmatprep.subr.bf16.mxu1 %v4830_v20 }
  0x4c   : > { %4197 = vmatpush3.bf16.msra.mxu1 %v4831_v21 }
  0x4d   : > { %4198 = vmatprep.subr.bf16.mxu1 %v4833_v22 }
  0x50   : > { %4199 = vmatpush3.bf16.msra.mxu1 %v4834_v23 }
  0x51   : > { %4200 = vmatprep.subr.bf16.mxu1 %v4836_v24 }
  0x54   : > { %4201 = vmatpush3.bf16.msra.mxu1 %v4837_v25 }
  0x55   : > { %4202 = vmatprep.subr.bf16.mxu1 %v4838_v26 }
  0x58   : > { %4203 = vmatpush3.bf16.msra.mxu1 %v4839_v27 }
  0x59   : > { %4204 = vmatprep.subr.bf16.mxu1 %v4840_v28 }
  0x5c   : > { %4205 = vmatpush3.bf16.msra.mxu1 %v4841_v30 }
  0x5d   : > { %4206 = vmatprep.subr.bf16.mxu1 %v4843_v45 }
  0x60   : > { %4207 = vmatpush3.bf16.msra.mxu1 %v4844_v51 }
  0x61   : > { %4208 = vmatprep.subr.bf16.mxu1 %v4845_v52  ;;  %v4813_v52 = vld [vmem:[%s6353_s4 + $0x108] sm:$0xff]  }
  0x64   : > { %4209 = vmatpush3.bf16.msra.mxu1 %v4846_v59 }
  0xf9   : > { %v4372_v31 = vpop.f32.mrb[0].mxu0 }
  0xfa   : > { %v683_v33 = vmul.f32 %v4372_v31, %v5122_v29  ;;  %v547_v34 = vpop.f32.mrb[1].mxu0  ;;  %v4388_v35 = vpop.f32.mrb[0].mxu1 }
  0xfb   : > { %v681_v36 = vmul.f32 %v5122_v29, %v547_v34  ;;  %v4373_v37 = vpop.f32.mrb[2].mxu0  ;;  %v699_v38 = vmul.f32 %v4388_v35, %v5122_v29  ;;  %v611_v39 = vpop.f32.mrb[1].mxu1 }
  0xfc   : > { %v722_v40 = vadd.f32 %v5130_v32, %v683_v33  ;;  %v684_v41 = vmul.f32 %v4373_v37, %v5122_v29  ;;  %v550_v42 = vpop.f32.mrb[3].mxu0  ;;  %v697_v43 = vmul.f32 %v5122_v29, %v611_v39  ;;  %v4389_v44 = vpop.f32.mrb[2].mxu1 }
  0xfd   : > { %v720_v46 = vadd.f32 %v5130_v32, %v681_v36  ;;  %v682_v47 = vmul.f32 %v5122_v29, %v550_v42  ;;  %v738_v48 = vadd.f32 %v5130_v32, %v699_v38  ;;  %v700_v49 = vmul.f32 %v4389_v44, %v5122_v29  ;;  %v614_v50 = vpop.f32.mrb[3].mxu1  ;;  %v4832_v36 = vld [vmem:[%s6353_s4 + $0x148] sm:$0xff]   ;;  %v4854_v38 = vld [vmem:[%s6353_s4 + $0x218] sm:$0xff]  }
  0xfe   : > { %v723_v53 = vadd.f32 %v5130_v32, %v684_v41  ;;  %v736_v54 = vadd.f32 %v5130_v32, %v697_v43  ;;  %v698_v55 = vmul.f32 %v5122_v29, %v614_v50  ;;  %v754_v60 = vmax.f32 %v722_v40, 0.0 }
  0xff   : > { %v721_v56 = vadd.f32 %v5130_v32, %v682_v47  ;;  %v770_v57 = vmax.f32 %v738_v48, 0.0  ;;  %v739_v58 = vadd.f32 %v5130_v32, %v700_v49  ;;  %v752_v63 = vmax.f32 %v720_v46, 0.0  ;;  %v4812_v47 = vld [vmem:[%s6353_s4 + $0xc0] sm:$0xff]  }
 0x100   : > { %v755_v61 = vmax.f32 %v723_v53, 0.0  ;;  %v737_v62 = vadd.f32 %v5130_v32, %v698_v55  ;;  %v768_v6 = vmax.f32 %v736_v54, 0.0 }
 0x101   : > { %v753_v0 = vmax.f32 %v721_v56, 0.0  ;;  %v4376_v1 = vpop.f32.mrb[4].mxu0  ;;  %v771_v2 = vmax.f32 %v739_v58, 0.0 }
 0x102   : > { %v5160_v3 = vpack.c.bf16 %v755_v61, %v754_v60  ;;  %v687_v4 = vmul.f32 %v4376_v1, %v5122_v29  ;;  %v563_v5 = vpop.f32.mrb[5].mxu0  ;;  %v4392_v7 = vpop.f32.mrb[4].mxu1  ;;  %v769_v12 = vmax.f32 %v737_v62, 0.0 }
 0x103   : > { %v5163_v8 = vpack.c.bf16 %v753_v0, %v752_v63  ;;  %v685_v9 = vmul.f32 %v5122_v29, %v563_v5  ;;  %v4377_v10 = vpop.f32.mrb[6].mxu0  ;;  %v5166_v11 = vpack.c.bf16 %v771_v2, %v770_v57  ;;  %v5168_v13 = vpop.f32.mrb[5].mxu1  ;;  %v703_v30 = vmul.f32 %v4392_v7, %v5122_v29 }
 0x104   : > { %v726_v14 = vadd.f32 %v5130_v32, %v687_v4  ;;  %v688_v16 = vmul.f32 %v4377_v10, %v5122_v29  ;;  %v566_v17 = vpop.f32.mrb[7].mxu0  ;;  %v815_v18 = vshrl.u32 %v5160_v3, 16  ;;  %v818_v19 = vshll.u32 %v5160_v3, 16  ;;  %v5174_v20 = vpop.f32.mrb[6].mxu1 }
 0x105   : > { %v724_v21 = vadd.f32 %v5130_v32, %v685_v9  ;;  %v686_v22 = vmul.f32 %v5122_v29, %v566_v17  ;;  %1350 = vmatprep.mubr.bf16.mxu1 %v5163_v8  ;;  %v808_v23 = vshrl.u32 %v5163_v8, 16  ;;  %v811_v24 = vshll.u32 %v5163_v8, 16  ;;  %v5181_v25 = vpop.f32.mrb[7].mxu1  ;;  %v4814_v9 = vld [vmem:[%s6353_s4 + $0xc8] sm:$0xff]  }
 0x106   : > { %v727_v26 = vadd.f32 %v5130_v32, %v688_v16  ;;  %v989_v27 = vrot.slane %v818_v19, 1  ;;  %v817_v28 = vrot.slane %v815_v18, 7  ;;  %v758_v31 = vmax.f32 %v726_v14, 0.0 }
 0x107   : > { %v725_v33 = vadd.f32 %v5130_v32, %v686_v22  ;;  %v810_v34 = vrot.slane %v808_v23, 7  ;;  %v987_v35 = vrot.slane %v811_v24, 1  ;;  %v5198_v41 = vpack.c.bf16 %v769_v12, %v768_v6 }
 0x108   : > { %v759_v37 = vmax.f32 %v727_v26, 0.0  ;;  %v990_v39 = vor.u32 %v989_v27, %v815_v18  ;;  %v820_v40 = vor.u32 %v818_v19, %v817_v28  ;;  %v756_v42 = vmax.f32 %v724_v21, 0.0  ;;  %v4815_v18 = vld [vmem:[%s6353_s4 + $0x110] sm:$0xff]  }
 0x109   : > { %v757_v43 = vmax.f32 %v725_v33, 0.0  ;;  %v4380_v44 = vpop.f32.mrb[8].mxu0  ;;  %v813_v45 = vor.u32 %v811_v24, %v810_v34  ;;  %v988_v46 = vor.u32 %v987_v35, %v808_v23  ;;  %v5214_v53 = vadd.f32 %v5130_v32, %v703_v30 }
 0x10a   : > { %v5203_v48 = vpack.c.bf16 %v759_v37, %v758_v31  ;;  %v691_v49 = vmul.f32 %v4380_v44, %v5122_v29  ;;  %v579_v50 = vpop.f32.mrb[9].mxu0  ;;  %v5208_v51 = vsel %vm5188_vm4, %v990_v39, 0  ;;  %v5216_v54 = vpop.f32.mrb[8].mxu1  ;;  %v5237_v0 = vsel %vm5194_vm5, 0, %v820_v40 }
 0x10b   : > { %v5218_v55 = vpack.c.bf16 %v757_v43, %v756_v42  ;;  %v689_v56 = vmul.f32 %v5122_v29, %v579_v50  ;;  %v4381_v57 = vpop.f32.mrb[10].mxu0  ;;  %v5223_v58 = vsel %vm5194_vm5, 0, %v813_v45  ;;  %v5227_v59 = vsel %vm5188_vm4, %v988_v46, 0  ;;  %v5229_v60 = vpop.f32.mrb[9].mxu1  ;;  %v4816_v42 = vld [vmem:[%s6353_s4 + $0xd0] sm:$0xff]   ;;  %v4817_v50 = vld [vmem:[%s6353_s4 + $0x118] sm:$0xff]  }
 0x10c   : > { %v730_v61 = vadd.f32 %v5130_v32, %v691_v49  ;;  %v692_v62 = vmul.f32 %v4381_v57, %v5122_v29  ;;  %v582_v63 = vpop.f32.mrb[11].mxu0  ;;  %1351 = vmatmul.mubr.bf16.gmra.mrb[20].mxu1 %v5223_v58  ;;  %4419 = vmatmul.mubr.bf16.vlgmr.msra.gmra.mrb[16].mxu0 %v5227_v59  ;;  %v832_v1 = vshll.u32 %v5203_v48, 16  ;;  %v5240_v2 = vpop.f32.mrb[10].mxu1  ;;  %v829_v16 = vshrl.u32 %v5203_v48, 16 }
 0x10d   : > { %v728_v4 = vadd.f32 %v5130_v32, %v689_v56  ;;  %v690_v5 = vmul.f32 %v5122_v29, %v582_v63  ;;  %4059 = vmatpush3.bf16.msra.mxu0 %v4812_v47  ;;  %1358 = vmatprep.mubr.bf16.mxu1 %v5160_v3  ;;  %v822_v6 = vshrl.u32 %v5218_v55, 16  ;;  %v825_v7 = vshll.u32 %v5218_v55, 16  ;;  %v5250_v10 = vpop.f32.mrb[11].mxu1 }
 0x10e   : > { %v762_v12 = vmax.f32 %v730_v61, 0.0  ;;  %v731_v14 = vadd.f32 %v5130_v32, %v692_v62  ;;  %4422 = vmatprep.mubr.bf16.mxu0 %v5208_v51  ;;  %4060 = vmatprep.subr.bf16.mxu0 %v4813_v52  ;;  %v993_v17 = vrot.slane %v832_v1, 1  ;;  %v774_v22 = vmax.f32 %v5214_v53, 0.0 }
 0x10f   : > { %v729_v19 = vadd.f32 %v5130_v32, %v690_v5  ;;  %v991_v21 = vrot.slane %v825_v7, 1  ;;  %v824_v23 = vrot.slane %v822_v6, 7  ;;  %v760_v24 = vmax.f32 %v728_v4, 0.0 }
 0x110   : > { %v763_v26 = vmax.f32 %v731_v14, 0.0  ;;  %v994_v27 = vor.u32 %v993_v17, %v829_v16  ;;  %v701_v28 = vmul.f32 %v5122_v29, %v5168_v13  ;;  %v704_v35 = vmul.f32 %v5174_v20, %v5122_v29 }
 0x111   : > { %v761_v30 = vmax.f32 %v729_v19, 0.0  ;;  %v4384_v31 = vpop.f32.mrb[12].mxu0  ;;  %v992_v33 = vor.u32 %v991_v21, %v822_v6  ;;  %4061 = vmatpush3.bf16.msra.mxu0 %v4814_v9  ;;  %v827_v34 = vor.u32 %v825_v7, %v824_v23  ;;  %v702_v43 = vmul.f32 %v5122_v29, %v5181_v25  ;;  %v4818_v19 = vld [vmem:[%s6353_s4 + $0xd8] sm:$0xff]  }
 0x112   : > { %v5268_v37 = vpack.c.bf16 %v763_v26, %v762_v12  ;;  %v695_v39 = vmul.f32 %v4384_v31, %v5122_v29  ;;  %v595_v40 = vpop.f32.mrb[13].mxu0  ;;  %4062 = vmatprep.subr.bf16.mxu0 %v4815_v18  ;;  %v740_v13 = vadd.f32 %v5130_v32, %v701_v28  ;;  %v5277_v44 = vpop.f32.mrb[12].mxu1  ;;  %v5288_v49 = vsel %vm5188_vm4, %v994_v27, 0  ;;  %v4819_v27 = vld [vmem:[%s6353_s4 + $0x120] sm:$0xff]  }
 0x113   : > { %v5279_v45 = vpack.c.bf16 %v761_v30, %v760_v24  ;;  %v693_v20 = vmul.f32 %v5122_v29, %v595_v40  ;;  %v4385_v46 = vpop.f32.mrb[14].mxu0  ;;  %v5284_v47 = vsel %vm5188_vm4, %v992_v33, 0  ;;  %v5293_v25 = vpop.f32.mrb[13].mxu1  ;;  %v743_v18 = vadd.f32 %v5130_v32, %v704_v35 }
 0x114   : > { %v734_v52 = vadd.f32 %v5130_v32, %v695_v39  ;;  %v696_v56 = vmul.f32 %v4385_v46, %v5122_v29  ;;  %v598_v57 = vpop.f32.mrb[15].mxu0  ;;  %1359 = vmatmul.mubr.bf16.gmra.mrb[24].mxu1 %v5237_v0  ;;  %4423 = vmatmul.mubr.bf16.gmra.mrb[20].mxu0 %v5284_v47  ;;  %v772_v61 = vmax.f32 %v740_v13, 0.0  ;;  %v843_v62 = vshrl.u32 %v5268_v37, 16  ;;  %v5300_v63 = vpop.f32.mrb[14].mxu1 }
 0x115   : > { %v732_v4 = vadd.f32 %v5130_v32, %v693_v20  ;;  %v694_v5 = vmul.f32 %v5122_v29, %v598_v57  ;;  %1366 = vmatprep.mubr.bf16.mxu1 %v5218_v55  ;;  %4426 = vmatprep.mubr.bf16.mxu0 %v5288_v49  ;;  %v836_v6 = vshrl.u32 %v5279_v45, 16  ;;  %v839_v7 = vshll.u32 %v5279_v45, 16  ;;  %v5308_v9 = vpop.f32.mrb[15].mxu1 }
 0x116   : > { %v766_v12 = vmax.f32 %v734_v52, 0.0  ;;  %v735_v14 = vadd.f32 %v5130_v32, %v696_v56  ;;  %4063 = vmatpush3.bf16.msra.mxu0 %v4816_v42  ;;  %v846_v17 = vshll.u32 %v5268_v37, 16  ;;  %v741_v26 = vadd.f32 %v5130_v32, %v702_v43 }
 0x117   : > { %v764_v21 = vmax.f32 %v732_v4, 0.0  ;;  %v733_v23 = vadd.f32 %v5130_v32, %v694_v5  ;;  %v995_v24 = vrot.slane %v839_v7, 1  ;;  %4064 = vmatprep.subr.bf16.mxu0 %v4817_v50  ;;  %v775_v31 = vmax.f32 %v743_v18, 0.0 }
 0x118   : > { %v767_v28 = vmax.f32 %v735_v14, 0.0  ;;  %v997_v30 = vrot.slane %v846_v17, 1  ;;  %v707_v33 = vmul.f32 %v5216_v54, %v5122_v29  ;;  %v773_v40 = vmax.f32 %v741_v26, 0.0  ;;  %v4820_v54 = vld [vmem:[%s6353_s4 + $0xe0] sm:$0xff]  }
 0x119   : > { %v765_v35 = vmax.f32 %v733_v23, 0.0  ;;  %v996_v39 = vor.u32 %v995_v24, %v836_v6  ;;  %v831_v42 = vrot.slane %v829_v16, 7  ;;  %v5337_v20 = vpack.c.bf16 %v775_v31, %v774_v22  ;;  %v4821_v22 = vld [vmem:[%s6353_s4 + $0x128] sm:$0xff]  }
 0x11a   : > { %v5331_v13 = vpack.c.bf16 %v767_v28, %v766_v12  ;;  %v998_v43 = vor.u32 %v997_v30, %v843_v62  ;;  %v746_v46 = vadd.f32 %v5130_v32, %v707_v33  ;;  %4065 = vmatpush3.bf16.msra.mxu0 %v4818_v19  ;;  %v5347_v16 = vsel %vm5194_vm5, 0, %v827_v34 }
 0x11b   : > { %v5343_v50 = vpack.c.bf16 %v765_v35, %v764_v21  ;;  %v5351_v52 = vsel %vm5188_vm4, %v996_v39, 0  ;;  %v5353_v53 = vpack.c.bf16 %v773_v40, %v772_v61  ;;  %4066 = vmatprep.subr.bf16.mxu0 %v4819_v27  ;;  %v705_v34 = vmul.f32 %v5122_v29, %v5229_v60 }
 0x11c   : > { %1367 = vmatmul.mubr.bf16.gmra.mrb[28].mxu1 %v5347_v16  ;;  %4427 = vmatmul.mubr.bf16.gmra.mrb[24].mxu0 %v5351_v52  ;;  %v5362_v56 = vsel %vm5188_vm4, %v998_v43, 0  ;;  %v778_v57 = vmax.f32 %v746_v46, 0.0  ;;  %v834_v61 = vor.u32 %v832_v1, %v831_v42  ;;  %v860_v5 = vshll.u32 %v5331_v13, 16  ;;  %v4822_v1 = vld [vmem:[%s6353_s4 + $0xe8] sm:$0xff]   ;;  %v4824_v42 = vld [vmem:[%s6353_s4 + $0xf0] sm:$0xff]  }
 0x11d   : > { %1374 = vmatprep.mubr.bf16.mxu1 %v5203_v48  ;;  %4430 = vmatprep.mubr.bf16.mxu0 %v5362_v56  ;;  %v853_v4 = vshll.u32 %v5343_v50, 16  ;;  %v744_v12 = vadd.f32 %v5130_v32, %v705_v34  ;;  %v708_v14 = vmul.f32 %v5240_v2, %v5122_v29  ;;  %v706_v60 = vmul.f32 %v5122_v29, %v5250_v10  ;;  %v4823_v10 = vld [vmem:[%s6353_s4 + $0x130] sm:$0xff]  }
 0x11e   : > { %v711_v18 = vmul.f32 %v5277_v44, %v5122_v29  ;;  %4067 = vmatpush3.bf16.msra.mxu0 %v4820_v54  ;;  %v850_v19 = vshrl.u32 %v5343_v50, 16  ;;  %v857_v23 = vshrl.u32 %v5331_v13, 16  ;;  %v1001_v2 = vrot.slane %v860_v5, 1 }
 0x11f   : > { %v999_v21 = vrot.slane %v853_v4, 1  ;;  %4068 = vmatprep.subr.bf16.mxu0 %v4821_v22  ;;  %v776_v44 = vmax.f32 %v744_v12, 0.0  ;;  %v747_v24 = vadd.f32 %v5130_v32, %v708_v14  ;;  %v745_v26 = vadd.f32 %v5130_v32, %v706_v60 }
 0x120   : > { %v750_v27 = vadd.f32 %v5130_v32, %v711_v18  ;;  %v1002_v30 = vor.u32 %v1001_v2, %v857_v23  ;;  %v838_v31 = vrot.slane %v836_v6, 7  ;;  %v867_v33 = vshll.u32 %v5198_v41, 16 }
 0x121   : > { %v1000_v28 = vor.u32 %v999_v21, %v850_v19  ;;  %v779_v35 = vmax.f32 %v747_v24, 0.0  ;;  %v777_v39 = vmax.f32 %v745_v26, 0.0  ;;  %v709_v40 = vmul.f32 %v5122_v29, %v5293_v25  ;;  %v4825_v25 = vld [vmem:[%s6353_s4 + $0x138] sm:$0xff]  }
 0x122   : > { %4069 = vmatpush3.bf16.msra.mxu0 %v4822_v1  ;;  %v5408_v43 = vsel %vm5194_vm5, 0, %v834_v61  ;;  %v864_v6 = vshrl.u32 %v5198_v41, 16  ;;  %v1003_v54 = vrot.slane %v867_v33, 1  ;;  %v5424_v22 = vsel %vm5188_vm4, %v1002_v30, 0 }
 0x123   : > { %v5412_v46 = vsel %vm5188_vm4, %v1000_v28, 0  ;;  %4070 = vmatprep.subr.bf16.mxu0 %v4823_v10  ;;  %v5426_v34 = vpack.c.bf16 %v779_v35, %v778_v57  ;;  %v5428_v61 = vpack.c.bf16 %v777_v39, %v776_v44  ;;  %v748_v12 = vadd.f32 %v5130_v32, %v709_v40 }
 0x124   : > { %1375 = vmatmul.mubr.bf16.gmra.mrb[32].mxu1 %v5408_v43  ;;  %4431 = vmatmul.mubr.bf16.gmra.mrb[28].mxu0 %v5412_v46  ;;  %v841_v14 = vor.u32 %v839_v7, %v838_v31  ;;  %v874_v60 = vshll.u32 %v5166_v11, 16  ;;  %v712_v18 = vmul.f32 %v5300_v63, %v5122_v29  ;;  %v710_v57 = vmul.f32 %v5122_v29, %v5308_v9  ;;  %v4826_v7 = vld [vmem:[%s6353_s4 + $0xf8] sm:$0xff]   ;;  %v5454_v9 = vld [vmem:[%s6353_s4 + $0x140] sm:$0xff]  }
 0x125   : > { %1382 = vmatprep.mubr.bf16.mxu1 %v5279_v45  ;;  %4434 = vmatprep.mubr.bf16.mxu0 %v5424_v22  ;;  %v782_v1 = vmax.f32 %v750_v27, 0.0  ;;  %v1004_v21 = vor.u32 %v1003_v54, %v864_v6  ;;  %v780_v2 = vmax.f32 %v748_v12, 0.0  ;;  %v871_v10 = vshrl.u32 %v5166_v11, 16 }
 0x126   : > { %4071 = vmatpush3.bf16.msra.mxu0 %v4824_v42  ;;  %v1005_v44 = vrot.slane %v874_v60, 1  ;;  %v751_v63 = vadd.f32 %v5130_v32, %v712_v18  ;;  %v749_v24 = vadd.f32 %v5130_v32, %v710_v57  ;;  %v881_v29 = vshll.u32 %v5353_v53, 16 }
 0x127   : > { %4072 = vmatprep.subr.bf16.mxu0 %v4825_v25  ;;  %v888_v26 = vshll.u32 %v5337_v20, 16  ;;  %v5461_v31 = vsel %vm5194_vm5, 0, %v841_v14  ;;  %v845_v32 = vrot.slane %v843_v62, 7  ;;  %v5467_v35 = vsel %vm5188_vm4, %v1004_v21, 0 }
 0x128   : > { %v1006_v27 = vor.u32 %v1005_v44, %v871_v10  ;;  %v783_v28 = vmax.f32 %v751_v63, 0.0  ;;  %v781_v30 = vmax.f32 %v749_v24, 0.0  ;;  %v1007_v42 = vrot.slane %v881_v29, 1 }
 0x129   : > { %v1009_v54 = vrot.slane %v888_v26, 1  ;;  %v878_v25 = vshrl.u32 %v5353_v53, 16  ;;  %v885_v12 = vshrl.u32 %v5337_v20, 16  ;;  %v848_v14 = vor.u32 %v846_v17, %v845_v32 }
 0x12a   : > { %4073 = vmatpush3.bf16.msra.mxu0 %v4826_v7  ;;  %v5469_v39 = vpack.c.bf16 %v783_v28, %v782_v1  ;;  %v5471_v40 = vpack.c.bf16 %v781_v30, %v780_v2  ;;  %v5480_v62 = vsel %vm5188_vm4, %v1006_v27, 0  ;;  %v6364_v57 = vshll.u32 %v5428_v61, 16 }
 0x12b   : > { %4450 = vmatprep.subr.bf16.mxu0 %v5454_v9  ;;  %v1008_v18 = vor.u32 %v1007_v42, %v878_v25  ;;  %v1010_v1 = vor.u32 %v1009_v54, %v885_v12  ;;  %v6363_v21 = vshll.u32 %v5426_v34, 16  ;;  %v852_v2 = vrot.slane %v850_v19, 7 }
 0x12c   : > { %1383 = vmatmul.mubr.bf16.gmra.mrb[36].mxu1 %v5461_v31  ;;  %4435 = vmatmul.mubr.bf16.gmra.mrb[32].mxu0 %v5467_v35  ;;  %v5500_v7 = vsel %vm5194_vm5, 0, %v848_v14  ;;  %v1011_v44 = vrot.slane %v6364_v57, 1  ;;  %v6365_v24 = vshrl.u32 %v5428_v61, 16  ;;  %v913_v27 = vshrl.u32 %v5469_v39, 16 }
 0x12d   : > { %1390 = vmatprep.mubr.bf16.mxu1 %v5268_v37  ;;  %4438 = vmatprep.mubr.bf16.mxu0 %v5480_v62  ;;  %v5504_v17 = vsel %vm5188_vm4, %v1008_v18, 0  ;;  %v5512_v63 = vsel %vm5188_vm4, %v1010_v1, 0  ;;  %v1013_v19 = vrot.slane %v6363_v21, 1  ;;  %v916_v28 = vshll.u32 %v5469_v39, 16 }
 0x12e   : > { %v855_v30 = vor.u32 %v853_v4, %v852_v2  ;;  %v899_v32 = vshrl.u32 %v5426_v34, 16  ;;  %v1012_v42 = vor.u32 %v1011_v44, %v6365_v24  ;;  %v909_v54 = vshll.u32 %v5471_v40, 16 }
 0x12f   : > { %v915_v14 = vrot.slane %v913_v27, 7  ;;  %v1017_v18 = vrot.slane %v916_v28, 1  ;;  %v859_v4 = vrot.slane %v857_v23, 7 }
 0x130   : > { %v1014_v1 = vor.u32 %v1013_v19, %v899_v32  ;;  %v5531_v57 = vsel %vm5194_vm5, 0, %v855_v30  ;;  %v5537_v2 = vsel %vm5188_vm4, %v1012_v42, 0  ;;  %v1015_v44 = vrot.slane %v909_v54, 1 }
 0x131   : > { %v918_v15 = vor.u32 %v916_v28, %v915_v14  ;;  %v1018_v21 = vor.u32 %v1017_v18, %v913_v27  ;;  %v906_v27 = vshrl.u32 %v5471_v40, 16  ;;  %v866_v42 = vrot.slane %v864_v6, 7  ;;  %v3938_v18 = vpop.f32.mrb[16].mxu1 }
 0x132   : > { %v5553_v23 = vsel %vm5188_vm4, %v1014_v1, 0  ;;  %v873_v6 = vrot.slane %v871_v10, 7  ;;  %v3939_v1 = vpop.f32.mrb[17].mxu1 }
 0x133   : > { %v5543_v24 = vsel %vm5194_vm5, 0, %v918_v15  ;;  %v5547_v19 = vsel %vm5188_vm4, %v1018_v21, 0  ;;  %v862_v15 = vor.u32 %v860_v5, %v859_v4  ;;  %v1016_v21 = vor.u32 %v1015_v44, %v906_v27 }
 0x134   : > { %1391 = vmatmul.mubr.bf16.gmra.mrb[40].mxu1 %v5500_v7  ;;  %4439 = vmatmul.mubr.bf16.gmra.mrb[36].mxu0 %v5504_v17  ;;  %v869_v5 = vor.u32 %v867_v33, %v866_v42  ;;  %v876_v33 = vor.u32 %v874_v60, %v873_v6  ;;  %v5615_v4 = vadd.f32 %v3939_v1, %v3938_v18  ;;  %v901_v18 = vrot.slane %v899_v32, 7 }
 0x135   : > { %1398 = vmatprep.mubr.bf16.mxu1 %v5343_v50  ;;  %4442 = vmatprep.mubr.bf16.mxu0 %v5512_v63  ;;  %v5564_v28 = vsel %vm5194_vm5, 0, %v862_v15  ;;  %v5568_v30 = vsel %vm5188_vm4, %v1016_v21, 0  ;;  %v887_v15 = vrot.slane %v885_v12, 7  ;;  %v3941_v21 = vpop.f32.mrb[18].mxu1  ;;  %v6372_v1 = vshll.u32 %v5426_v34, 16 }
 0x136   : > { %v5583_v14 = vsel %vm5194_vm5, 0, %v869_v5  ;;  %v5599_v10 = vsel %vm5194_vm5, 0, %v876_v33  ;;  %v3942_v42 = vpop.f32.mrb[19].mxu1 }
 0x137   : > { %v5630_v5 = vadd.f32 %v3942_v42, %v3941_v21  ;;  %v890_v12 = vor.u32 %v888_v26, %v887_v15  ;;  %v6371_v26 = vshll.u32 %v5428_v61, 16  ;;  %v904_v15 = vor.u32 %v6372_v1, %v901_v18 }
 0x138   : > { %v908_v21 = vrot.slane %v906_v27, 7 }
 0x139   : > { %v5639_v6 = vsel %vm5194_vm5, 0, %v890_v12 }
 0x13a   : > { %v911_v32 = vor.u32 %v909_v54, %v908_v21 }
 0x13c   : > { %1399 = vmatmul.mubr.bf16.gmra.mrb[44].mxu1 %v5531_v57  ;;  %4443 = vmatmul.mubr.bf16.gmra.mrb[40].mxu0 %v5537_v2  ;;  %v5681_v42 = vsel %vm5194_vm5, 0, %v911_v32 }
 0x13d   : > { %1406 = vmatprep.mubr.bf16.mxu1 %v5331_v13  ;;  %4446 = vmatprep.mubr.bf16.mxu0 %v5553_v23 }
 0x144   : > { %1407 = vmatmul.mubr.bf16.gmra.mrb[48].mxu1 %v5564_v28  ;;  %4447 = vmatmul.mubr.bf16.gmra.mrb[44].mxu0 %v5568_v30 }
 0x145   : > { %1414 = vmatprep.mubr.bf16.mxu1 %v5198_v41  ;;  %1969 = vmatprep.mubr.bf16.mxu0 %v5163_v8  ;;  %v4835_v8 = vld [vmem:[%s6353_s4 + $0x150] sm:$0xff]  }
 0x14c   : > { %1415 = vmatmul.mubr.bf16.gmra.mrb[52].mxu1 %v5583_v14  ;;  %1970 = vmatmul.mubr.bf16.vlgmr.msra.gmra.mrb[48].mxu0 %v5223_v58  ;;  %v880_v58 = vrot.slane %v878_v25, 7  ;;  %v4847_v25 = vld [vmem:[%s6353_s4 + $0x160] sm:$0xff]  }
 0x14d   : > { %4451 = vmatpush3.bf16.msra.mxu0 %v5454_v9  ;;  %1422 = vmatprep.mubr.bf16.mxu1 %v5166_v11  ;;  %v4842_v9 = vld [vmem:[%s6353_s4 + $0x158] sm:$0xff]  }
 0x14e   : > { %1977 = vmatprep.mubr.bf16.mxu0 %v5160_v3  ;;  %4452 = vmatprep.subr.bf16.mxu0 %v4832_v36  ;;  %v883_v60 = vor.u32 %v881_v29, %v880_v58  ;;  %v4848_v29 = vld [vmem:[%s6353_s4 + $0x168] sm:$0xff]   ;;  %v4850_v58 = vld [vmem:[%s6353_s4 + $0x178] sm:$0xff]  }
 0x150   : > { %v5619_v44 = vsel %vm5194_vm5, 0, %v883_v60  ;;  %v4851_v60 = vld [vmem:[%s6353_s4 + $0x200] sm:$0xff]  }
 0x151   : > { %4453 = vmatpush3.bf16.msra.mxu0 %v4832_v36  ;;  %v4849_v36 = vld [vmem:[%s6353_s4 + $0x170] sm:$0xff]  }
 0x152   : > { %4454 = vmatprep.subr.bf16.mxu0 %v4835_v8 }
 0x154   : > { %1423 = vmatmul.mubr.bf16.gmra.mrb[56].mxu1 %v5599_v10  ;;  %1978 = vmatmul.mubr.bf16.gmra.mrb[52].mxu0 %v5237_v0 }
 0x155   : > { %1430 = vmatprep.mubr.bf16.mxu1 %v5353_v53  ;;  %1985 = vmatprep.mubr.bf16.mxu0 %v5218_v55 }
 0x156   : > { %4455 = vmatpush3.bf16.msra.mxu0 %v4835_v8  ;;  %v6370_v8 = vshrl.u32 %v5428_v61, 16 }
 0x157   : > { %4456 = vmatprep.subr.bf16.mxu0 %v4842_v9 }
 0x158   : > { %v894_v33 = vrot.slane %v6370_v8, 7 }
 0x15a   : > { %4457 = vmatpush3.bf16.msra.mxu0 %v4842_v9  ;;  %v897_v9 = vor.u32 %v6371_v26, %v894_v33 }
 0x15b   : > { %4458 = vmatprep.subr.bf16.mxu0 %v4847_v25 }
 0x15c   : > { %1431 = vmatmul.mubr.bf16.gmra.mrb[60].mxu1 %v5619_v44  ;;  %1986 = vmatmul.mubr.bf16.gmra.mrb[56].mxu0 %v5347_v16 }
 0x15d   : > { %1438 = vmatprep.mubr.bf16.mxu1 %v5337_v20  ;;  %1993 = vmatprep.mubr.bf16.mxu0 %v5203_v48 }
 0x15e   : > { %4459 = vmatpush3.bf16.msra.mxu0 %v4847_v25  ;;  %v5657_v25 = vsel %vm5194_vm5, 0, %v897_v9 }
 0x15f   : > { %4460 = vmatprep.subr.bf16.mxu0 %v4848_v29 }
 0x162   : > { %4461 = vmatpush3.bf16.msra.mxu0 %v4848_v29  ;;  %v5669_v29 = vsel %vm5194_vm5, 0, %v904_v15 }
 0x163   : > { %4462 = vmatprep.subr.bf16.mxu0 %v4849_v36 }
 0x164   : > { %1439 = vmatmul.mubr.bf16.gmra.mrb[64].mxu1 %v5639_v6  ;;  %1994 = vmatmul.mubr.bf16.gmra.mrb[60].mxu0 %v5408_v43 }
 0x165   : > { %1446 = vmatprep.mubr.bf16.mxu1 %v5428_v61  ;;  %2001 = vmatprep.mubr.bf16.mxu0 %v5279_v45 }
 0x166   : > { %4463 = vmatpush3.bf16.msra.mxu0 %v4849_v36 }
 0x167   : > { %4464 = vmatprep.subr.bf16.mxu0 %v4850_v58 }
 0x16a   : > { %4465 = vmatpush3.bf16.msra.mxu0 %v4850_v58 }
 0x16b   : > { %4498 = vmatprep.subr.bf16.mxu0 %v4851_v60 }
 0x16c   : > { %1447 = vmatmul.mubr.bf16.gmra.mrb[68].mxu1 %v5657_v25  ;;  %2002 = vmatmul.mubr.bf16.gmra.mrb[64].mxu0 %v5461_v31 }
 0x16d   : > { %1454 = vmatprep.mubr.bf16.mxu1 %v5426_v34  ;;  %2009 = vmatprep.mubr.bf16.mxu0 %v5268_v37 }
 0x174   : > { %1455 = vmatmul.mubr.bf16.gmra.mrb[72].mxu1 %v5669_v29  ;;  %2010 = vmatmul.mubr.bf16.gmra.mrb[68].mxu0 %v5500_v7 }
 0x175   : > { %1462 = vmatprep.mubr.bf16.mxu1 %v5471_v40  ;;  %2017 = vmatprep.mubr.bf16.mxu0 %v5343_v50 }
 0x17c   : > { %1463 = vmatmul.mubr.bf16.gmra.mrb[76].mxu1 %v5681_v42  ;;  %2018 = vmatmul.mubr.bf16.gmra.mrb[72].mxu0 %v5531_v57 }
 0x17d   : > { %2025 = vmatprep.mubr.bf16.mxu0 %v5331_v13  ;;  %2629 = vmatprep.mubr.bf16.mxu1 %v5160_v3  ;;  %v4852_v3 = vld [vmem:[%s6353_s4 + $0x208] sm:$0xff]  }
 0x184   : > { %2026 = vmatmul.mubr.bf16.gmra.mrb[76].mxu0 %v5564_v28  ;;  %2630 = vmatmul.mubr.bf16.vlgmr.msra.gmra.mrb[80].mxu1 %v5237_v0 }
 0x185   : > { %2033 = vmatprep.mubr.bf16.mxu0 %v5198_v41  ;;  %2637 = vmatprep.mubr.bf16.mxu1 %v5218_v55 }
 0x18c   : > { %2034 = vmatmul.mubr.bf16.gmra.mrb[80].mxu0 %v5583_v14  ;;  %2638 = vmatmul.mubr.bf16.gmra.mrb[84].mxu1 %v5347_v16 }
 0x18d   : > { %2041 = vmatprep.mubr.bf16.mxu0 %v5166_v11  ;;  %2645 = vmatprep.mubr.bf16.mxu1 %v5203_v48  ;;  %v4856_v48 = vld [vmem:[%s6353_s4 + $0x228] sm:$0xff]  }
 0x194   : > { %2042 = vmatmul.mubr.bf16.gmra.mrb[84].mxu0 %v5599_v10  ;;  %2646 = vmatmul.mubr.bf16.gmra.mrb[88].mxu1 %v5408_v43 }
 0x195   : > { %2049 = vmatprep.mubr.bf16.mxu0 %v5353_v53  ;;  %2653 = vmatprep.mubr.bf16.mxu1 %v5279_v45 }
 0x19c   : > { %2050 = vmatmul.mubr.bf16.gmra.mrb[88].mxu0 %v5619_v44  ;;  %2654 = vmatmul.mubr.bf16.gmra.mrb[92].mxu1 %v5461_v31 }
 0x19d   : > { %2057 = vmatprep.mubr.bf16.mxu0 %v5337_v20  ;;  %2661 = vmatprep.mubr.bf16.mxu1 %v5268_v37 }
 0x1a4   : > { %2058 = vmatmul.mubr.bf16.gmra.mrb[92].mxu0 %v5639_v6  ;;  %2662 = vmatmul.mubr.bf16.gmra.mrb[96].mxu1 %v5500_v7 }
 0x1a5   : > { %2065 = vmatprep.mubr.bf16.mxu0 %v5428_v61  ;;  %2669 = vmatprep.mubr.bf16.mxu1 %v5343_v50  ;;  %v4858_v50 = vld [vmem:[%s6353_s4 + $0x238] sm:$0xff]  }
 0x1ac   : > { %2066 = vmatmul.mubr.bf16.gmra.mrb[96].mxu0 %v5657_v25  ;;  %2670 = vmatmul.mubr.bf16.gmra.mrb[100].mxu1 %v5531_v57 }
 0x1ad   : > { %2073 = vmatprep.mubr.bf16.mxu0 %v5426_v34  ;;  %2677 = vmatprep.mubr.bf16.mxu1 %v5331_v13 }
 0x1b4   : > { %2074 = vmatmul.mubr.bf16.gmra.mrb[100].mxu0 %v5669_v29  ;;  %2678 = vmatmul.mubr.bf16.gmra.mrb[104].mxu1 %v5564_v28 }
 0x1b5   : > { %2081 = vmatprep.mubr.bf16.mxu0 %v5471_v40  ;;  %2685 = vmatprep.mubr.bf16.mxu1 %v5198_v41  ;;  %v4855_v41 = vld [vmem:[%s6353_s4 + $0x220] sm:$0xff]  }
 0x1bc   : > { %2082 = vmatmul.mubr.bf16.gmra.mrb[104].mxu0 %v5681_v42  ;;  %2686 = vmatmul.mubr.bf16.gmra.mrb[108].mxu1 %v5583_v14 }
 0x1bd   : > { %2089 = vmatprep.mubr.bf16.mxu0 %v5469_v39  ;;  %2693 = vmatprep.mubr.bf16.mxu1 %v5166_v11  ;;  %v4853_v11 = vld [vmem:[%s6353_s4 + $0x210] sm:$0xff]  }
 0x1c4   : > { %2090 = vmatmul.mubr.bf16.gmra.mrb[108].mxu0 %v5543_v24  ;;  %2694 = vmatmul.mubr.bf16.gmra.mrb[112].mxu1 %v5599_v10 }
 0x1c5   : > { %4466 = vmatprep.mubr.bf16.mxu0 %v5227_v59  ;;  %2701 = vmatprep.mubr.bf16.mxu1 %v5353_v53  ;;  %v4857_v59 = vld [vmem:[%s6353_s4 + $0x230] sm:$0xff]  }
 0x1cc   : > { %4467 = vmatmul.mubr.bf16.vlgmr.msra.gmra.mrb[16].mxu0 %v5208_v51  ;;  %2702 = vmatmul.mubr.bf16.gmra.mrb[116].mxu1 %v5619_v44 }
 0x1cd   : > { %4499 = vmatpush3.bf16.msra.mxu0 %v4851_v60  ;;  %4470 = vmatprep.mubr.bf16.mxu0 %v5284_v47 }
 0x1ce   : > { %2709 = vmatprep.mubr.bf16.mxu1 %v5337_v20  ;;  %4500 = vmatprep.subr.bf16.mxu0 %v4852_v3 }
 0x1d1   : > { %4501 = vmatpush3.bf16.msra.mxu0 %v4852_v3 }
 0x1d2   : > { %4502 = vmatprep.subr.bf16.mxu0 %v4853_v11 }
 0x1d4   : > { %4471 = vmatmul.mubr.bf16.gmra.mrb[20].mxu0 %v5288_v49  ;;  %2710 = vmatmul.mubr.bf16.gmra.mrb[120].mxu1 %v5639_v6 }
 0x1d5   : > { %4474 = vmatprep.mubr.bf16.mxu0 %v5351_v52  ;;  %2717 = vmatprep.mubr.bf16.mxu1 %v5428_v61 }
 0x1d6   : > { %4503 = vmatpush3.bf16.msra.mxu0 %v4853_v11 }
 0x1d7   : > { %4504 = vmatprep.subr.bf16.mxu0 %v4854_v38 }
 0x1da   : > { %4505 = vmatpush3.bf16.msra.mxu0 %v4854_v38 }
 0x1db   : > { %4506 = vmatprep.subr.bf16.mxu0 %v4855_v41 }
 0x1dc   : > { %4475 = vmatmul.mubr.bf16.gmra.mrb[24].mxu0 %v5362_v56  ;;  %2718 = vmatmul.mubr.bf16.gmra.mrb[124].mxu1 %v5657_v25 }
 0x1dd   : > { %4478 = vmatprep.mubr.bf16.mxu0 %v5412_v46  ;;  %2725 = vmatprep.mubr.bf16.mxu1 %v5426_v34 }
 0x1de   : > { %4507 = vmatpush3.bf16.msra.mxu0 %v4855_v41 }
 0x1df   : > { %v3944_v55 = vpop.f32.mrb[20].mxu1  ;;  %4508 = vmatprep.subr.bf16.mxu0 %v4856_v48 }
 0x1e0   : > { %v3945_v0 = vpop.f32.mrb[21].mxu1 }
 0x1e1   : > { %v5753_v37 = vadd.f32 %v3945_v0, %v3944_v55  ;;  %v3947_v45 = vpop.f32.mrb[22].mxu1 }
 0x1e2   : > { %v3948_v13 = vpop.f32.mrb[23].mxu1  ;;  %4509 = vmatpush3.bf16.msra.mxu0 %v4856_v48 }
 0x1e3   : > { %v5755_v20 = vadd.f32 %v3948_v13, %v3947_v45  ;;  %4510 = vmatprep.subr.bf16.mxu0 %v4857_v59  ;;  %v4862_v13 = vld [vmem:[%s6356_s7 + $0x18] sm:$0xff]  }
 0x1e4   : > { %4479 = vmatmul.mubr.bf16.gmra.mrb[28].mxu0 %v5424_v22  ;;  %2726 = vmatmul.mubr.bf16.gmra.mrb[128].mxu1 %v5669_v29 }
 0x1e5   : > { %4482 = vmatprep.mubr.bf16.mxu0 %v5467_v35  ;;  %2733 = vmatprep.mubr.bf16.mxu1 %v5471_v40  ;;  %v4859_v40 = vld [vmem:[%s6356_s7] sm:$0xff]  }
 0x1e6   : > { %4511 = vmatpush3.bf16.msra.mxu0 %v4857_v59  ;;  %4546 = vmatprep.subr.bf16.mxu1 %v4859_v40 }
 0x1e7   : > { %v3950_v16 = vpop.f32.mrb[24].mxu1  ;;  %4512 = vmatprep.subr.bf16.mxu0 %v4858_v50  ;;  %4547 = vmatpush3.bf16.msra.mxu1 %v4859_v40 }
 0x1e8   : > { %v3951_v53 = vpop.f32.mrb[25].mxu1 }
 0x1e9   : > { %v5764_v43 = vadd.f32 %v3951_v53, %v3950_v16  ;;  %v3953_v34 = vpop.f32.mrb[26].mxu1 }
 0x1ea   : > { %v3954_v61 = vpop.f32.mrb[27].mxu1  ;;  %4513 = vmatpush3.bf16.msra.mxu0 %v4858_v50 }
 0x1eb   : > { %v5766_v31 = vadd.f32 %v3954_v61, %v3953_v34 }
 0x1ec   : > { %4483 = vmatmul.mubr.bf16.gmra.mrb[32].mxu0 %v5480_v62  ;;  %2734 = vmatmul.mubr.bf16.gmra.mrb[132].mxu1 %v5681_v42  ;;  %v4861_v42 = vld [vmem:[%s6356_s7 + $0x10] sm:$0xff]  }
 0x1ed   : > { %4486 = vmatprep.mubr.bf16.mxu0 %v5504_v17  ;;  %2741 = vmatprep.mubr.bf16.mxu1 %v5469_v39  ;;  %v6373_v39 = vmov 0  }
 0x1ef   : > { %v3956_v57 = vpop.f32.mrb[28].mxu1 }
 0x1f0   : > { %v3957_v7 = vpop.f32.mrb[29].mxu1 }
 0x1f1   : > { %v5775_v54 = vadd.f32 %v3957_v7, %v3956_v57  ;;  %v3959_v27 = vpop.f32.mrb[30].mxu1 }
 0x1f2   : > { %v3960_v28 = vpop.f32.mrb[31].mxu1 }
 0x1f3   : > { %v5777_v14 = vadd.f32 %v3960_v28, %v3959_v27 }
 0x1f4   : > { %4487 = vmatmul.mubr.bf16.gmra.mrb[36].mxu0 %v5512_v63  ;;  %2742 = vmatmul.mubr.bf16.gmra.mrb[136].mxu1 %v5543_v24  ;;  %v4860_v24 = vld [vmem:[%s6356_s7 + $0x8] sm:$0xff]  }
 0x1f5   : > { %4490 = vmatprep.mubr.bf16.mxu0 %v5537_v2  ;;  %2749 = vmatprep.mubr.bf16.mxu1 %v6373_v39 }
 0x1f6   : > { %4548 = vmatprep.subr.bf16.mxu1 %v4860_v24 }
 0x1f7   : > { %v3962_v10 = vpop.f32.mrb[32].mxu1  ;;  %4549 = vmatpush3.bf16.msra.mxu1 %v4860_v24 }
 0x1f8   : > { %v3963_v44 = vpop.f32.mrb[33].mxu1  ;;  %4550 = vmatprep.subr.bf16.mxu1 %v4861_v42 }
 0x1f9   : > { %v5783_v12 = vadd.f32 %v3963_v44, %v3962_v10  ;;  %v3965_v36 = vpop.f32.mrb[34].mxu1 }
 0x1fa   : > { %v3966_v6 = vpop.f32.mrb[35].mxu1 }
 0x1fb   : > { %v5785_v8 = vadd.f32 %v3966_v6, %v3965_v36  ;;  %4551 = vmatpush3.bf16.msra.mxu1 %v4861_v42 }
 0x1fc   : > { %4491 = vmatmul.mubr.bf16.gmra.mrb[40].mxu0 %v5553_v23  ;;  %2750 = vmatmul.mubr.bf16.gmra.mrb[140].mxu1 %v6373_v39 }
 0x1fd   : > { %4494 = vmatprep.mubr.bf16.mxu0 %v5568_v30  ;;  %4552 = vmatprep.subr.bf16.mxu1 %v4862_v13 }
 0x1ff   : > { %v3968_v33 = vpop.f32.mrb[36].mxu1  ;;  %4553 = vmatpush3.bf16.msra.mxu1 %v4862_v13 }
 0x200   : > { %v3969_v58 = vpop.f32.mrb[37].mxu1 }
 0x201   : > { %v5793_v26 = vadd.f32 %v3969_v58, %v3968_v33  ;;  %v3971_v9 = vpop.f32.mrb[38].mxu1 }
 0x202   : > { %v3972_v60 = vpop.f32.mrb[39].mxu1 }
 0x203   : > { %v5795_v25 = vadd.f32 %v3972_v60, %v3971_v9 }
 0x204   : > { %4495 = vmatmul.mubr.bf16.gmra.mrb[44].mxu0 %v5547_v19 }
 0x205   : > { %4514 = vmatprep.mubr.bf16.mxu0 %v5208_v51 }
 0x207   : > { %v3974_v18 = vpop.f32.mrb[40].mxu1 }
 0x208   : > { %v3975_v1 = vpop.f32.mrb[41].mxu1 }
 0x209   : > { %v5799_v15 = vadd.f32 %v3975_v1, %v3974_v18  ;;  %v3977_v29 = vpop.f32.mrb[42].mxu1 }
 0x20a   : > { %v3978_v21 = vpop.f32.mrb[43].mxu1 }
 0x20b   : > { %v5801_v32 = vadd.f32 %v3978_v21, %v3977_v29 }
 0x20c   : > { %4515 = vmatmul.mubr.bf16.vlgmr.msra.gmra.mrb[16].mxu0 %v5284_v47 }
 0x20d   : > { %4518 = vmatprep.mubr.bf16.mxu0 %v5288_v49 }
 0x20f   : > { %v3980_v3 = vpop.f32.mrb[44].mxu1 }
 0x210   : > { %v3981_v11 = vpop.f32.mrb[45].mxu1 }
 0x211   : > { %v5808_v51 = vadd.f32 %v3981_v11, %v3980_v3  ;;  %v3983_v38 = vpop.f32.mrb[46].mxu1 }
 0x212   : > { %v3984_v41 = vpop.f32.mrb[47].mxu1 }
 0x213   : > { %v5810_v48 = vadd.f32 %v3984_v41, %v3983_v38 }
 0x214   : > { %4519 = vmatmul.mubr.bf16.gmra.mrb[20].mxu0 %v5351_v52 }
 0x215   : > { %4522 = vmatprep.mubr.bf16.mxu0 %v5362_v56 }
 0x217   : > { %v3986_v47 = vpop.f32.mrb[48].mxu1 }
 0x218   : > { %v3987_v49 = vpop.f32.mrb[49].mxu1 }
 0x219   : > { %v5814_v55 = vadd.f32 %v3987_v49, %v3986_v47  ;;  %v3989_v59 = vpop.f32.mrb[50].mxu1 }
 0x21a   : > { %v3990_v0 = vpop.f32.mrb[51].mxu1 }
 0x21b   : > { %v5816_v45 = vadd.f32 %v3990_v0, %v3989_v59 }
 0x21c   : > { %4523 = vmatmul.mubr.bf16.gmra.mrb[24].mxu0 %v5412_v46 }
 0x21d   : > { %4526 = vmatprep.mubr.bf16.mxu0 %v5424_v22 }
 0x21f   : > { %v3992_v50 = vpop.f32.mrb[52].mxu1  ;;  %v4074_v52 = vpop.f32.mrb[48].mxu0 }
 0x220   : > { %v3993_v56 = vpop.f32.mrb[53].mxu1  ;;  %v4075_v16 = vpop.f32.mrb[49].mxu0 }
 0x221   : > { %v5823_v53 = vadd.f32 %v3993_v56, %v3992_v50  ;;  %v4076_v34 = vadd.f32 %v4075_v16, %v4074_v52  ;;  %v3995_v61 = vpop.f32.mrb[54].mxu1  ;;  %v4077_v40 = vpop.f32.mrb[50].mxu0 }
 0x222   : > { %v3996_v57 = vpop.f32.mrb[55].mxu1  ;;  %v4078_v7 = vpop.f32.mrb[51].mxu0 }
 0x223   : > { %v5826_v46 = vadd.f32 %v4076_v34, %v5615_v4  ;;  %v5828_v22 = vadd.f32 %v3996_v57, %v3995_v61  ;;  %v4079_v27 = vadd.f32 %v4078_v7, %v4077_v40 }
 0x224   : > { %4527 = vmatmul.mubr.bf16.gmra.mrb[28].mxu0 %v5467_v35 }
 0x225   : > { %v5832_v28 = vadd.f32 %v4079_v27, %v5630_v5  ;;  %4530 = vmatprep.mubr.bf16.mxu0 %v5480_v62  ;;  %v4863_v62 = vld [vmem:[%s6356_s7 + $0x20] sm:$0xff]  }
 0x226   : > { %4554 = vmatprep.subr.bf16.mxu1 %v4863_v62 }
 0x227   : > { %v3998_v10 = vpop.f32.mrb[56].mxu1  ;;  %v4080_v44 = vpop.f32.mrb[52].mxu0  ;;  %4555 = vmatpush3.bf16.msra.mxu1 %v4863_v62 }
 0x228   : > { %v3999_v36 = vpop.f32.mrb[57].mxu1  ;;  %v4081_v6 = vpop.f32.mrb[53].mxu0 }
 0x229   : > { %v5835_v24 = vadd.f32 %v3999_v36, %v3998_v10  ;;  %v4082_v33 = vadd.f32 %v4081_v6, %v4080_v44  ;;  %v4001_v58 = vpop.f32.mrb[58].mxu1  ;;  %v4083_v4 = vpop.f32.mrb[54].mxu0 }
 0x22a   : > { %v4002_v9 = vpop.f32.mrb[59].mxu1  ;;  %v4084_v60 = vpop.f32.mrb[55].mxu0 }
 0x22b   : > { %v5838_v18 = vadd.f32 %v4082_v33, %v5753_v37  ;;  %v5840_v35 = vadd.f32 %v4002_v9, %v4001_v58  ;;  %v4085_v5 = vadd.f32 %v4084_v60, %v4083_v4 }
 0x22c   : > { %4531 = vmatmul.mubr.bf16.gmra.mrb[32].mxu0 %v5504_v17 }
 0x22d   : > { %v5847_v1 = vadd.f32 %v4085_v5, %v5755_v20  ;;  %4534 = vmatprep.mubr.bf16.mxu0 %v5512_v63 }
 0x22f   : > { %v4004_v29 = vpop.f32.mrb[60].mxu1  ;;  %v4086_v21 = vpop.f32.mrb[56].mxu0 }
 0x230   : > { %v4005_v37 = vpop.f32.mrb[61].mxu1  ;;  %v4087_v42 = vpop.f32.mrb[57].mxu0 }
 0x231   : > { %v5850_v3 = vadd.f32 %v4005_v37, %v4004_v29  ;;  %v4088_v11 = vadd.f32 %v4087_v42, %v4086_v21  ;;  %v4007_v38 = vpop.f32.mrb[62].mxu1  ;;  %v4089_v41 = vpop.f32.mrb[58].mxu0 }
 0x232   : > { %v4008_v47 = vpop.f32.mrb[63].mxu1  ;;  %v4090_v49 = vpop.f32.mrb[59].mxu0 }
 0x233   : > { %v5853_v17 = vadd.f32 %v4088_v11, %v5764_v43  ;;  %v5855_v20 = vadd.f32 %v4008_v47, %v4007_v38  ;;  %v4091_v59 = vadd.f32 %v4090_v49, %v4089_v41 }
 0x234   : > { %4535 = vmatmul.mubr.bf16.gmra.mrb[36].mxu0 %v5537_v2 }
 0x235   : > { %v5859_v63 = vadd.f32 %v4091_v59, %v5766_v31  ;;  %4538 = vmatprep.mubr.bf16.mxu0 %v5553_v23  ;;  %v4864_v23 = vld [vmem:[%s6356_s7 + $0x28] sm:$0xff]  }
 0x236   : > { %4556 = vmatprep.subr.bf16.mxu1 %v4864_v23 }
 0x237   : > { %v4010_v0 = vpop.f32.mrb[64].mxu1  ;;  %v4092_v13 = vpop.f32.mrb[60].mxu0  ;;  %4557 = vmatpush3.bf16.msra.mxu1 %v4864_v23 }
 0x238   : > { %v4011_v50 = vpop.f32.mrb[65].mxu1  ;;  %v4093_v52 = vpop.f32.mrb[61].mxu0 }
 0x239   : > { %v5862_v56 = vadd.f32 %v4011_v50, %v4010_v0  ;;  %v4094_v16 = vadd.f32 %v4093_v52, %v4092_v13  ;;  %v4013_v34 = vpop.f32.mrb[66].mxu1  ;;  %v4095_v43 = vpop.f32.mrb[62].mxu0 }
 0x23a   : > { %v4014_v61 = vpop.f32.mrb[67].mxu1  ;;  %v4096_v40 = vpop.f32.mrb[63].mxu0 }
 0x23b   : > { %v5865_v57 = vadd.f32 %v4094_v16, %v5775_v54  ;;  %v5867_v2 = vadd.f32 %v4014_v61, %v4013_v34  ;;  %v4097_v31 = vadd.f32 %v4096_v40, %v4095_v43 }
 0x23c   : > { %4539 = vmatmul.mubr.bf16.gmra.mrb[40].mxu0 %v5568_v30 }
 0x23d   : > { %v5874_v7 = vadd.f32 %v4097_v31, %v5777_v14  ;;  %4542 = vmatprep.mubr.bf16.mxu0 %v5547_v19 }
 0x23f   : > { %v4016_v27 = vpop.f32.mrb[68].mxu1  ;;  %v4098_v10 = vpop.f32.mrb[64].mxu0 }
 0x240   : > { %v4017_v54 = vpop.f32.mrb[69].mxu1  ;;  %v4099_v44 = vpop.f32.mrb[65].mxu0 }
 0x241   : > { %v5877_v36 = vadd.f32 %v4017_v54, %v4016_v27  ;;  %v4100_v6 = vadd.f32 %v4099_v44, %v4098_v10  ;;  %v4019_v33 = vpop.f32.mrb[70].mxu1  ;;  %v4101_v58 = vpop.f32.mrb[66].mxu0  ;;  %v4866_v27 = vld [vmem:[%s6356_s7 + $0x38] sm:$0xff]  }
 0x242   : > { %v4020_v4 = vpop.f32.mrb[71].mxu1  ;;  %v4102_v9 = vpop.f32.mrb[67].mxu0 }
 0x243   : > { %v5880_v30 = vadd.f32 %v4100_v6, %v5783_v12  ;;  %v5882_v14 = vadd.f32 %v4020_v4, %v4019_v33  ;;  %v4103_v60 = vadd.f32 %v4102_v9, %v4101_v58 }
 0x244   : > { %4543 = vmatmul.mubr.bf16.gmra.mrb[44].mxu0 %v6373_v39 }
 0x245   : > { %v5886_v19 = vadd.f32 %v4103_v60, %v5785_v8  ;;  %v4865_v8 = vld [vmem:[%s6356_s7 + $0x30] sm:$0xff]  }
 0x246   : > { %4558 = vmatprep.subr.bf16.mxu1 %v4865_v8 }
 0x247   : > { %v4022_v5 = vpop.f32.mrb[72].mxu1  ;;  %v4104_v62 = vpop.f32.mrb[68].mxu0  ;;  %4559 = vmatpush3.bf16.msra.mxu1 %v4865_v8 }
 0x248   : > { %v4023_v29 = vpop.f32.mrb[73].mxu1  ;;  %v4105_v21 = vpop.f32.mrb[69].mxu0  ;;  %4560 = vmatprep.subr.bf16.mxu1 %v4866_v27 }
 0x249   : > { %v5888_v37 = vadd.f32 %v4023_v29, %v4022_v5  ;;  %v4106_v42 = vadd.f32 %v4105_v21, %v4104_v62  ;;  %v4025_v11 = vpop.f32.mrb[74].mxu1  ;;  %v4107_v38 = vpop.f32.mrb[70].mxu0 }
 0x24a   : > { %v4026_v41 = vpop.f32.mrb[75].mxu1  ;;  %v4108_v12 = vpop.f32.mrb[71].mxu0 }
 0x24b   : > { %v5891_v47 = vadd.f32 %v4106_v42, %v5793_v26  ;;  %v5893_v49 = vadd.f32 %v4026_v41, %v4025_v11  ;;  %v4109_v39 = vadd.f32 %v4108_v12, %v4107_v38  ;;  %4561 = vmatpush3.bf16.msra.mxu1 %v4866_v27 }
 0x24d   : > { %v5899_v59 = vadd.f32 %v4109_v39, %v5795_v25 }
 0x24f   : > { %v4028_v0 = vpop.f32.mrb[76].mxu1  ;;  %v4110_v13 = vpop.f32.mrb[72].mxu0 }
 0x250   : > { %v4029_v50 = vpop.f32.mrb[77].mxu1  ;;  %v4111_v52 = vpop.f32.mrb[73].mxu0 }
 0x251   : > { %v5901_v16 = vadd.f32 %v4029_v50, %v4028_v0  ;;  %v4112_v26 = vadd.f32 %v4111_v52, %v4110_v13  ;;  %v4031_v34 = vpop.f32.mrb[78].mxu1  ;;  %v4113_v43 = vpop.f32.mrb[74].mxu0 }
 0x252   : > { %v4032_v61 = vpop.f32.mrb[79].mxu1  ;;  %v4114_v40 = vpop.f32.mrb[75].mxu0 }
 0x253   : > { %v5904_v31 = vadd.f32 %v4112_v26, %v5799_v15  ;;  %v5906_v23 = vadd.f32 %v4032_v61, %v4031_v34  ;;  %v4115_v25 = vadd.f32 %v4114_v40, %v4113_v43 }
 0x255   : > { %v5912_v10 = vadd.f32 %v4115_v25, %v5801_v32 }
 0x257   : > { %v4116_v54 = vpop.f32.mrb[76].mxu0  ;;  %v4210_v44 = vpop.f32.mrb[80].mxu1 }
 0x258   : > { %v4117_v6 = vpop.f32.mrb[77].mxu0  ;;  %v4211_v33 = vpop.f32.mrb[81].mxu1 }
 0x259   : > { %v4118_v58 = vadd.f32 %v4117_v6, %v4116_v54  ;;  %v4212_v4 = vadd.f32 %v4211_v33, %v4210_v44  ;;  %v4119_v15 = vpop.f32.mrb[78].mxu0  ;;  %v4213_v9 = vpop.f32.mrb[82].mxu1 }
 0x25a   : > { %v4120_v60 = vpop.f32.mrb[79].mxu0  ;;  %v4214_v5 = vpop.f32.mrb[83].mxu1 }
 0x25b   : > { %v5915_v62 = vadd.f32 %v4118_v58, %v5808_v51  ;;  %v4121_v29 = vadd.f32 %v4120_v60, %v4119_v15  ;;  %v4215_v21 = vadd.f32 %v4214_v5, %v4213_v9  ;;  %v5918_v32 = vadd.f32 %v5826_v46, %v4212_v4 }
 0x25d   : > { %v5921_v42 = vadd.f32 %v4121_v29, %v5810_v48  ;;  %v5924_v11 = vadd.f32 %v5832_v28, %v4215_v21 }
 0x25f   : > { %v4122_v38 = vpop.f32.mrb[80].mxu0  ;;  %v4216_v41 = vpop.f32.mrb[84].mxu1 }
 0x260   : > { %v4123_v12 = vpop.f32.mrb[81].mxu0  ;;  %v4217_v39 = vpop.f32.mrb[85].mxu1 }
 0x261   : > { %v4124_v8 = vadd.f32 %v4123_v12, %v4122_v38  ;;  %v4218_v0 = vadd.f32 %v4217_v39, %v4216_v41  ;;  %v4125_v13 = vpop.f32.mrb[82].mxu0  ;;  %v4219_v51 = vpop.f32.mrb[86].mxu1 }
 0x262   : > { %v4126_v50 = vpop.f32.mrb[83].mxu0  ;;  %v4220_v52 = vpop.f32.mrb[87].mxu1 }
 0x263   : > { %v5927_v26 = vadd.f32 %v4124_v8, %v5814_v55  ;;  %v4127_v46 = vadd.f32 %v4126_v50, %v4125_v13  ;;  %v4221_v34 = vadd.f32 %v4220_v52, %v4219_v51  ;;  %v5930_v48 = vadd.f32 %v5838_v18, %v4218_v0 }
 0x265   : > { %v5933_v28 = vadd.f32 %v4127_v46, %v5816_v45  ;;  %v5936_v43 = vadd.f32 %v5847_v1, %v4221_v34 }
 0x267   : > { %v4128_v61 = vpop.f32.mrb[84].mxu0  ;;  %v4222_v40 = vpop.f32.mrb[88].mxu1 }
 0x268   : > { %v4129_v25 = vpop.f32.mrb[85].mxu0  ;;  %v4223_v27 = vpop.f32.mrb[89].mxu1 }
 0x269   : > { %v4130_v54 = vadd.f32 %v4129_v25, %v4128_v61  ;;  %v4224_v44 = vadd.f32 %v4223_v27, %v4222_v40  ;;  %v4131_v6 = vpop.f32.mrb[86].mxu0  ;;  %v4225_v55 = vpop.f32.mrb[90].mxu1 }
 0x26a   : > { %v4132_v33 = vpop.f32.mrb[87].mxu0  ;;  %v4226_v58 = vpop.f32.mrb[91].mxu1 }
 0x26b   : > { %v5939_v4 = vadd.f32 %v4130_v54, %v5823_v53  ;;  %v4133_v18 = vadd.f32 %v4132_v33, %v4131_v6  ;;  %v4227_v15 = vadd.f32 %v4226_v58, %v4225_v55  ;;  %v5942_v45 = vadd.f32 %v5853_v17, %v4224_v44 }
 0x26d   : > { %v5945_v1 = vadd.f32 %v4133_v18, %v5828_v22  ;;  %v5948_v9 = vadd.f32 %v5859_v63, %v4227_v15 }
 0x26f   : > { %v4134_v60 = vpop.f32.mrb[88].mxu0  ;;  %v4228_v5 = vpop.f32.mrb[92].mxu1 }
 0x270   : > { %v4135_v29 = vpop.f32.mrb[89].mxu0  ;;  %v4229_v21 = vpop.f32.mrb[93].mxu1 }
 0x271   : > { %v4136_v38 = vadd.f32 %v4135_v29, %v4134_v60  ;;  %v4230_v41 = vadd.f32 %v4229_v21, %v4228_v5  ;;  %v4137_v12 = vpop.f32.mrb[90].mxu0  ;;  %v4231_v53 = vpop.f32.mrb[94].mxu1 }
 0x272   : > { %v4138_v39 = vpop.f32.mrb[91].mxu0  ;;  %v4232_v8 = vpop.f32.mrb[95].mxu1 }
 0x273   : > { %v5951_v0 = vadd.f32 %v4136_v38, %v5835_v24  ;;  %v4139_v17 = vadd.f32 %v4138_v39, %v4137_v12  ;;  %v4233_v13 = vadd.f32 %v4232_v8, %v4231_v53  ;;  %v5954_v22 = vadd.f32 %v5865_v57, %v4230_v41 }
 0x275   : > { %v5957_v63 = vadd.f32 %v4139_v17, %v5840_v35  ;;  %v5960_v51 = vadd.f32 %v5874_v7, %v4233_v13 }
 0x277   : > { %v4140_v50 = vpop.f32.mrb[92].mxu0  ;;  %v4234_v52 = vpop.f32.mrb[96].mxu1 }
 0x278   : > { %v4141_v46 = vpop.f32.mrb[93].mxu0  ;;  %v4235_v34 = vpop.f32.mrb[97].mxu1 }
 0x279   : > { %v4142_v61 = vadd.f32 %v4141_v46, %v4140_v50  ;;  %v4236_v40 = vadd.f32 %v4235_v34, %v4234_v52  ;;  %v4143_v25 = vpop.f32.mrb[94].mxu0  ;;  %v4237_v24 = vpop.f32.mrb[98].mxu1 }
 0x27a   : > { %v4144_v27 = vpop.f32.mrb[95].mxu0  ;;  %v4238_v54 = vpop.f32.mrb[99].mxu1 }
 0x27b   : > { %v5963_v44 = vadd.f32 %v4142_v61, %v5850_v3  ;;  %v4145_v57 = vadd.f32 %v4144_v27, %v4143_v25  ;;  %v4239_v6 = vadd.f32 %v4238_v54, %v4237_v24  ;;  %v5966_v35 = vadd.f32 %v5880_v30, %v4236_v40 }
 0x27d   : > { %v5969_v7 = vadd.f32 %v4145_v57, %v5855_v20  ;;  %v5972_v55 = vadd.f32 %v5886_v19, %v4239_v6 }
 0x27f   : > { %v4146_v33 = vpop.f32.mrb[96].mxu0  ;;  %v4240_v58 = vpop.f32.mrb[100].mxu1 }
 0x280   : > { %v4147_v18 = vpop.f32.mrb[97].mxu0  ;;  %v4241_v15 = vpop.f32.mrb[101].mxu1 }
 0x281   : > { %v4148_v60 = vadd.f32 %v4147_v18, %v4146_v33  ;;  %v4242_v5 = vadd.f32 %v4241_v15, %v4240_v58  ;;  %v4149_v29 = vpop.f32.mrb[98].mxu0  ;;  %v4243_v3 = vpop.f32.mrb[102].mxu1 }
 0x282   : > { %v4150_v21 = vpop.f32.mrb[99].mxu0  ;;  %v4244_v38 = vpop.f32.mrb[103].mxu1 }
 0x283   : > { %v5975_v41 = vadd.f32 %v4148_v60, %v5862_v56  ;;  %v4151_v30 = vadd.f32 %v4150_v21, %v4149_v29  ;;  %v4245_v12 = vadd.f32 %v4244_v38, %v4243_v3  ;;  %v5978_v20 = vadd.f32 %v5891_v47, %v4242_v5 }
 0x285   : > { %v5981_v19 = vadd.f32 %v4151_v30, %v5867_v2  ;;  %v5984_v53 = vadd.f32 %v5899_v59, %v4245_v12 }
 0x287   : > { %v4152_v39 = vpop.f32.mrb[100].mxu0  ;;  %v4246_v8 = vpop.f32.mrb[104].mxu1 }
 0x288   : > { %v4153_v17 = vpop.f32.mrb[101].mxu0  ;;  %v4247_v13 = vpop.f32.mrb[105].mxu1 }
 0x289   : > { %v4154_v50 = vadd.f32 %v4153_v17, %v4152_v39  ;;  %v4248_v52 = vadd.f32 %v4247_v13, %v4246_v8  ;;  %v4155_v46 = vpop.f32.mrb[102].mxu0  ;;  %v4249_v56 = vpop.f32.mrb[106].mxu1 }
 0x28a   : > { %v4156_v34 = vpop.f32.mrb[103].mxu0  ;;  %v4250_v61 = vpop.f32.mrb[107].mxu1 }
 0x28b   : > { %v5987_v40 = vadd.f32 %v4154_v50, %v5877_v36  ;;  %v4157_v47 = vadd.f32 %v4156_v34, %v4155_v46  ;;  %v4251_v25 = vadd.f32 %v4250_v61, %v4249_v56  ;;  %v5990_v2 = vadd.f32 %v5904_v31, %v4248_v52 }
 0x28d   : > { %v5993_v59 = vadd.f32 %v4157_v47, %v5882_v14  ;;  %v5996_v24 = vadd.f32 %v5912_v10, %v4251_v25 }
 0x28f   : > { %v4158_v27 = vpop.f32.mrb[104].mxu0  ;;  %v4252_v54 = vpop.f32.mrb[108].mxu1 }
 0x290   : > { %v4159_v57 = vpop.f32.mrb[105].mxu0  ;;  %v4253_v6 = vpop.f32.mrb[109].mxu1 }
 0x291   : > { %v4160_v33 = vadd.f32 %v4159_v57, %v4158_v27  ;;  %v4254_v58 = vadd.f32 %v4253_v6, %v4252_v54  ;;  %v4161_v18 = vpop.f32.mrb[106].mxu0  ;;  %v4255_v36 = vpop.f32.mrb[110].mxu1 }
 0x292   : > { %v4162_v15 = vpop.f32.mrb[107].mxu0  ;;  %v4256_v60 = vpop.f32.mrb[111].mxu1 }
 0x293   : > { %v5999_v5 = vadd.f32 %v4160_v33, %v5888_v37  ;;  %v4163_v31 = vadd.f32 %v4162_v15, %v4161_v18  ;;  %v4257_v29 = vadd.f32 %v4256_v60, %v4255_v36  ;;  %v6002_v14 = vadd.f32 %v5915_v62, %v4254_v58 }
 0x295   : > { %v6005_v10 = vadd.f32 %v4163_v31, %v5893_v49  ;;  %v6008_v3 = vadd.f32 %v5921_v42, %v4257_v29 }
 0x297   : > { %v4164_v21 = vpop.f32.mrb[108].mxu0  ;;  %v4258_v38 = vpop.f32.mrb[112].mxu1 }
 0x298   : > { %v4165_v30 = vpop.f32.mrb[109].mxu0  ;;  %v4259_v12 = vpop.f32.mrb[113].mxu1 }
 0x299   : > { %v4166_v39 = vadd.f32 %v4165_v30, %v4164_v21  ;;  %v4260_v8 = vadd.f32 %v4259_v12, %v4258_v38  ;;  %v4167_v17 = vpop.f32.mrb[110].mxu0  ;;  %v4261_v37 = vpop.f32.mrb[114].mxu1 }
 0x29a   : > { %v4168_v13 = vpop.f32.mrb[111].mxu0  ;;  %v4262_v50 = vpop.f32.mrb[115].mxu1 }
 0x29b   : > { %v4694_v52 = vadd.f32 %v4166_v39, %v5901_v16  ;;  %v4169_v62 = vadd.f32 %v4168_v13, %v4167_v17  ;;  %v4263_v46 = vadd.f32 %v4262_v50, %v4261_v37  ;;  %v6012_v49 = vadd.f32 %v5927_v26, %v4260_v8 }
 0x29d   : > { %v4700_v42 = vadd.f32 %v4169_v62, %v5906_v23  ;;  %v6016_v56 = vadd.f32 %v5933_v28, %v4263_v46 }
 0x29f   : > { %v4264_v34 = vpop.f32.mrb[116].mxu1 }
 0x2a0   : > { %v4265_v61 = vpop.f32.mrb[117].mxu1 }
 0x2a1   : > { %v4266_v47 = vadd.f32 %v4265_v61, %v4264_v34  ;;  %v4267_v25 = vpop.f32.mrb[118].mxu1 }
 0x2a2   : > { %v4268_v27 = vpop.f32.mrb[119].mxu1 }
 0x2a3   : > { %v4269_v54 = vadd.f32 %v4268_v27, %v4267_v25  ;;  %v6019_v57 = vadd.f32 %v5939_v4, %v4266_v47 }
 0x2a5   : > { %v6022_v16 = vadd.f32 %v5945_v1, %v4269_v54 }
 0x2a7   : > { %v4270_v6 = vpop.f32.mrb[120].mxu1 }
 0x2a8   : > { %v4271_v26 = vpop.f32.mrb[121].mxu1 }
 0x2a9   : > { %v4272_v33 = vadd.f32 %v4271_v26, %v4270_v6  ;;  %v4273_v58 = vpop.f32.mrb[122].mxu1 }
 0x2aa   : > { %v4274_v23 = vpop.f32.mrb[123].mxu1 }
 0x2ab   : > { %v4275_v18 = vadd.f32 %v4274_v23, %v4273_v58  ;;  %v6025_v28 = vadd.f32 %v5951_v0, %v4272_v33 }
 0x2ad   : > { %v6028_v36 = vadd.f32 %v5957_v63, %v4275_v18 }
 0x2af   : > { %v4276_v15 = vpop.f32.mrb[124].mxu1 }
 0x2b0   : > { %v4277_v60 = vpop.f32.mrb[125].mxu1 }
 0x2b1   : > { %v4278_v31 = vadd.f32 %v4277_v60, %v4276_v15  ;;  %v4279_v4 = vpop.f32.mrb[126].mxu1 }
 0x2b2   : > { %v4280_v29 = vpop.f32.mrb[127].mxu1 }
 0x2b3   : > { %v4281_v21 = vadd.f32 %v4280_v29, %v4279_v4  ;;  %v6031_v1 = vadd.f32 %v5963_v44, %v4278_v31  ;;  %v6061_v4 = vld [vmem:[%s6354_s5] ss:$0 sm:$0xff] }
 0x2b4   : > { %v6067_v29 = vld [vmem:[%s6355_s6] ss:$0 sm:$0xff] }
 0x2b5   : > { %v6034_v38 = vadd.f32 %v5969_v7, %v4281_v21 }
 0x2b7   : > { %v4282_v30 = vpop.f32.mrb[128].mxu1 }
 0x2b8   : > { %v4283_v12 = vpop.f32.mrb[129].mxu1 }
 0x2b9   : > { %v4284_v39 = vadd.f32 %v4283_v12, %v4282_v30  ;;  %v4285_v0 = vpop.f32.mrb[130].mxu1 }
 0x2ba   : > { %v4286_v8 = vpop.f32.mrb[131].mxu1 }
 0x2bb   : > { %v4287_v17 = vadd.f32 %v4286_v8, %v4285_v0  ;;  %v6037_v63 = vadd.f32 %v5975_v41, %v4284_v39 }
 0x2bd   : > { %v6040_v37 = vadd.f32 %v5981_v19, %v4287_v17 }
 0x2bf   : > { %v4288_v13 = vpop.f32.mrb[132].mxu1 }
 0x2c0   : > { %v4289_v50 = vpop.f32.mrb[133].mxu1 }
 0x2c1   : > { %v4290_v62 = vadd.f32 %v4289_v50, %v4288_v13  ;;  %v4291_v44 = vpop.f32.mrb[134].mxu1 }
 0x2c2   : > { %v4292_v46 = vpop.f32.mrb[135].mxu1 }
 0x2c3   : > { %v4293_v34 = vadd.f32 %v4292_v46, %v4291_v44  ;;  %v6043_v7 = vadd.f32 %v5987_v40, %v4290_v62 }
 0x2c5   : > { %v6046_v61 = vadd.f32 %v5993_v59, %v4293_v34 }
 0x2c7   : > { %v4294_v47 = vpop.f32.mrb[136].mxu1 }
 0x2c8   : > { %v4295_v25 = vpop.f32.mrb[137].mxu1 }
 0x2c9   : > { %v4296_v27 = vadd.f32 %v4295_v25, %v4294_v47  ;;  %v4297_v41 = vpop.f32.mrb[138].mxu1 }
 0x2ca   : > { %v4298_v54 = vpop.f32.mrb[139].mxu1 }
 0x2cb   : > { %v4299_v6 = vadd.f32 %v4298_v54, %v4297_v41  ;;  %v6049_v19 = vadd.f32 %v5999_v5, %v4296_v27 }
 0x2cd   : > { %v6052_v26 = vadd.f32 %v6005_v10, %v4299_v6 }
 0x2cf   : > { %v4300_v33 = vpop.f32.mrb[140].mxu1 }
 0x2d0   : > { %v4301_v58 = vpop.f32.mrb[141].mxu1 }
 0x2d1   : > { %v4302_v23 = vadd.f32 %v4301_v58, %v4300_v33  ;;  %v4303_v40 = vpop.f32.mrb[142].mxu1 }
 0x2d2   : > { %v4304_v18 = vpop.f32.mrb[143].mxu1 }
 0x2d3   : > { %v4305_v15 = vadd.f32 %v4304_v18, %v4303_v40  ;;  %v6054_v59 = vadd.f32 %v4694_v52, %v4302_v23 }
 0x2d5   : > { %v6056_v60 = vadd.f32 %v4700_v42, %v4305_v15 }
 0x2df   : > { %v4516_v31 = vpop.f32.mrb[16].mxu0 }
 0x2e0   : > { %v4612_v5 = vadd.f32 %v5930_v48, %v4516_v31  ;;  %v2792_v10 = vpop.f32.mrb[17].mxu0 }
 0x2e1   : > { %v4615_v21 = vadd.f32 %v5918_v32, %v2792_v10  ;;  %v4517_v52 = vpop.f32.mrb[18].mxu0 }
 0x2e2   : > { %v3024_v42 = vmul.f32 %v4612_v5, %v6061_v4  ;;  %v4618_v30 = vadd.f32 %v5936_v43, %v4517_v52  ;;  %v2795_v12 = vpop.f32.mrb[19].mxu0 }
 0x2e3   : > { %v3022_v39 = vmul.f32 %v4615_v21, %v6061_v4  ;;  %v4621_v0 = vadd.f32 %v5924_v11, %v2795_v12 }
 0x2e4   : > { %v3063_v48 = vadd.f32 %v6067_v29, %v3024_v42  ;;  %v3025_v8 = vmul.f32 %v4618_v30, %v6061_v4 }
 0x2e5   : > { %v3061_v17 = vadd.f32 %v6067_v29, %v3022_v39  ;;  %v3023_v13 = vmul.f32 %v4621_v0, %v6061_v4 }
 0x2e6   : > { %v3064_v32 = vadd.f32 %v6067_v29, %v3025_v8  ;;  %v3095_v44 = vmax.f32 %v3063_v48, 0.0 }
 0x2e7   : > { %v3062_v50 = vadd.f32 %v6067_v29, %v3023_v13  ;;  %v4520_v62 = vpop.f32.mrb[20].mxu0  ;;  %v3093_v47 = vmax.f32 %v3061_v17, 0.0 }
 0x2e8   : > { %v3096_v43 = vmax.f32 %v3064_v32, 0.0  ;;  %v4624_v46 = vadd.f32 %v5954_v22, %v4520_v62  ;;  %v2808_v34 = vpop.f32.mrb[21].mxu0 }
 0x2e9   : > { %v3094_v11 = vmax.f32 %v3062_v50, 0.0  ;;  %v4627_v25 = vadd.f32 %v5942_v45, %v2808_v34  ;;  %v4521_v27 = vpop.f32.mrb[22].mxu0 }
 0x2ea   : > { %v3126_v41 = vpack.c.bf16 %v3096_v43, %v3095_v44  ;;  %v3028_v54 = vmul.f32 %v4624_v46, %v6061_v4  ;;  %v4630_v6 = vadd.f32 %v5960_v51, %v4521_v27  ;;  %v2811_v33 = vpop.f32.mrb[23].mxu0 }
 0x2eb   : > { %v3026_v58 = vmul.f32 %v4627_v25, %v6061_v4  ;;  %v4633_v23 = vadd.f32 %v5948_v9, %v2811_v33  ;;  %v3125_v40 = vpack.c.bf16 %v3094_v11, %v3093_v47 }
 0x2ec   : > { %v3067_v18 = vadd.f32 %v6067_v29, %v3028_v54  ;;  %v3029_v22 = vmul.f32 %v4630_v6, %v6061_v4 }
 0x2ed   : > { %v3065_v15 = vadd.f32 %v6067_v29, %v3026_v58  ;;  %v3027_v45 = vmul.f32 %v4633_v23, %v6061_v4  ;;  %4562 = vmatprep.mubr.bf16.mxu1 %v3125_v40 }
 0x2ee   : > { %v3068_v31 = vadd.f32 %v6067_v29, %v3029_v22  ;;  %4563 = vmatmul.mubr.bf16.vlgmr.msra.gmra.mrb[144].mxu1 %v3126_v41  ;;  %v3099_v10 = vmax.f32 %v3067_v18, 0.0 }
 0x2ef   : > { %v3066_v51 = vadd.f32 %v6067_v29, %v3027_v45  ;;  %v4524_v5 = vpop.f32.mrb[24].mxu0  ;;  %v3097_v42 = vmax.f32 %v3065_v15, 0.0 }
 0x2f0   : > { %v3100_v21 = vmax.f32 %v3068_v31, 0.0  ;;  %v4636_v9 = vadd.f32 %v5978_v20, %v4524_v5  ;;  %v2824_v52 = vpop.f32.mrb[25].mxu0 }
 0x2f1   : > { %v3098_v30 = vmax.f32 %v3066_v51, 0.0  ;;  %v4639_v12 = vadd.f32 %v5966_v35, %v2824_v52  ;;  %v4525_v39 = vpop.f32.mrb[26].mxu0 }
 0x2f2   : > { %v3032_v0 = vmul.f32 %v4636_v9, %v6061_v4  ;;  %v4642_v48 = vadd.f32 %v5984_v53, %v4525_v39  ;;  %v2827_v8 = vpop.f32.mrb[27].mxu0  ;;  %v3128_v17 = vpack.c.bf16 %v3100_v21, %v3099_v10 }
 0x2f3   : > { %v3030_v13 = vmul.f32 %v4639_v12, %v6061_v4  ;;  %v4645_v32 = vadd.f32 %v5972_v55, %v2827_v8  ;;  %v3127_v50 = vpack.c.bf16 %v3098_v30, %v3097_v42 }
 0x2f4   : > { %v3071_v62 = vadd.f32 %v6067_v29, %v3032_v0  ;;  %v3033_v20 = vmul.f32 %v4642_v48, %v6061_v4 }
 0x2f5   : > { %v3069_v44 = vadd.f32 %v6067_v29, %v3030_v13  ;;  %v3031_v35 = vmul.f32 %v4645_v32, %v6061_v4  ;;  %4566 = vmatprep.mubr.bf16.mxu1 %v3127_v50 }
 0x2f6   : > { %v3072_v43 = vadd.f32 %v6067_v29, %v3033_v20  ;;  %4567 = vmatmul.mubr.bf16.gmra.mrb[148].mxu1 %v3128_v17  ;;  %v3103_v34 = vmax.f32 %v3071_v62, 0.0 }
 0x2f7   : > { %v3070_v53 = vadd.f32 %v6067_v29, %v3031_v35  ;;  %v4528_v46 = vpop.f32.mrb[28].mxu0  ;;  %v3101_v25 = vmax.f32 %v3069_v44, 0.0 }
 0x2f8   : > { %v3104_v47 = vmax.f32 %v3072_v43, 0.0  ;;  %v4648_v55 = vadd.f32 %v6002_v14, %v4528_v46  ;;  %v2840_v11 = vpop.f32.mrb[29].mxu0 }
 0x2f9   : > { %v3102_v27 = vmax.f32 %v3070_v53, 0.0  ;;  %v4651_v41 = vadd.f32 %v5990_v2, %v2840_v11  ;;  %v4529_v54 = vpop.f32.mrb[30].mxu0 }
 0x2fa   : > { %v3036_v6 = vmul.f32 %v4648_v55, %v6061_v4  ;;  %v4654_v33 = vadd.f32 %v6008_v3, %v4529_v54  ;;  %v2843_v58 = vpop.f32.mrb[31].mxu0  ;;  %v3130_v23 = vpack.c.bf16 %v3104_v47, %v3103_v34 }
 0x2fb   : > { %v3034_v40 = vmul.f32 %v4651_v41, %v6061_v4  ;;  %v4657_v18 = vadd.f32 %v5996_v24, %v2843_v58  ;;  %v3129_v22 = vpack.c.bf16 %v3102_v27, %v3101_v25 }
 0x2fc   : > { %v3075_v15 = vadd.f32 %v6067_v29, %v3036_v6  ;;  %v3037_v14 = vmul.f32 %v4654_v33, %v6061_v4 }
 0x2fd   : > { %v3073_v45 = vadd.f32 %v6067_v29, %v3034_v40  ;;  %v3035_v2 = vmul.f32 %v4657_v18, %v6061_v4  ;;  %4570 = vmatprep.mubr.bf16.mxu1 %v3129_v22 }
 0x2fe   : > { %v3076_v31 = vadd.f32 %v6067_v29, %v3037_v14  ;;  %4571 = vmatmul.mubr.bf16.gmra.mrb[152].mxu1 %v3130_v23  ;;  %v3107_v5 = vmax.f32 %v3075_v15, 0.0 }
 0x2ff   : > { %v3074_v3 = vadd.f32 %v6067_v29, %v3035_v2  ;;  %v4532_v51 = vpop.f32.mrb[32].mxu0  ;;  %v3105_v9 = vmax.f32 %v3073_v45, 0.0 }
 0x300   : > { %v3108_v10 = vmax.f32 %v3076_v31, 0.0  ;;  %v4660_v24 = vadd.f32 %v6019_v57, %v4532_v51  ;;  %v2856_v21 = vpop.f32.mrb[33].mxu0 }
 0x301   : > { %v3106_v52 = vmax.f32 %v3074_v3, 0.0  ;;  %v4663_v42 = vadd.f32 %v6012_v49, %v2856_v21  ;;  %v4533_v30 = vpop.f32.mrb[34].mxu0 }
 0x302   : > { %v3040_v12 = vmul.f32 %v4660_v24, %v6061_v4  ;;  %v4666_v39 = vadd.f32 %v6022_v16, %v4533_v30  ;;  %v2859_v0 = vpop.f32.mrb[35].mxu0  ;;  %v3132_v48 = vpack.c.bf16 %v3108_v10, %v3107_v5 }
 0x303   : > { %v3038_v8 = vmul.f32 %v4663_v42, %v6061_v4  ;;  %v4669_v17 = vadd.f32 %v6016_v56, %v2859_v0  ;;  %v3131_v13 = vpack.c.bf16 %v3106_v52, %v3105_v9 }
 0x304   : > { %v3079_v32 = vadd.f32 %v6067_v29, %v3040_v12  ;;  %v3041_v57 = vmul.f32 %v4666_v39, %v6061_v4 }
 0x305   : > { %v3077_v50 = vadd.f32 %v6067_v29, %v3038_v8  ;;  %v3039_v49 = vmul.f32 %v4669_v17, %v6061_v4  ;;  %4574 = vmatprep.mubr.bf16.mxu1 %v3131_v13 }
 0x306   : > { %v3080_v62 = vadd.f32 %v6067_v29, %v3041_v57  ;;  %4575 = vmatmul.mubr.bf16.gmra.mrb[156].mxu1 %v3132_v48  ;;  %v3111_v44 = vmax.f32 %v3079_v32, 0.0 }
 0x307   : > { %v3078_v16 = vadd.f32 %v6067_v29, %v3039_v49  ;;  %v4536_v20 = vpop.f32.mrb[36].mxu0  ;;  %v3109_v53 = vmax.f32 %v3077_v50, 0.0 }
 0x308   : > { %v3112_v35 = vmax.f32 %v3080_v62, 0.0  ;;  %v4672_v56 = vadd.f32 %v6031_v1, %v4536_v20  ;;  %v2872_v43 = vpop.f32.mrb[37].mxu0 }
 0x309   : > { %v3110_v46 = vmax.f32 %v3078_v16, 0.0  ;;  %v4675_v34 = vadd.f32 %v6025_v28, %v2872_v43  ;;  %v4537_v47 = vpop.f32.mrb[38].mxu0 }
 0x30a   : > { %v3044_v55 = vmul.f32 %v4672_v56, %v6061_v4  ;;  %v4678_v11 = vadd.f32 %v6034_v38, %v4537_v47  ;;  %v2875_v25 = vpop.f32.mrb[39].mxu0  ;;  %v3134_v27 = vpack.c.bf16 %v3112_v35, %v3111_v44 }
 0x30b   : > { %v3042_v41 = vmul.f32 %v4675_v34, %v6061_v4  ;;  %v4681_v54 = vadd.f32 %v6028_v36, %v2875_v25  ;;  %v3133_v6 = vpack.c.bf16 %v3110_v46, %v3109_v53 }
 0x30c   : > { %v3083_v33 = vadd.f32 %v6067_v29, %v3044_v55  ;;  %v3045_v1 = vmul.f32 %v4678_v11, %v6061_v4 }
 0x30d   : > { %v3081_v58 = vadd.f32 %v6067_v29, %v3042_v41  ;;  %v3043_v28 = vmul.f32 %v4681_v54, %v6061_v4  ;;  %4578 = vmatprep.mubr.bf16.mxu1 %v3133_v6  ;;  %v3446_v41 = vld [vmem:[%s4959_s28 + $0x10] sm:$0xff] }
 0x30e   : > { %v3084_v23 = vadd.f32 %v6067_v29, %v3045_v1  ;;  %4579 = vmatmul.mubr.bf16.gmra.mrb[160].mxu1 %v3134_v27  ;;  %v3115_v18 = vmax.f32 %v3083_v33, 0.0  ;;  %v3444_v1 = vld [vmem:[%s4959_s28] sm:$0xff] }
 0x30f   : > { %v3082_v38 = vadd.f32 %v6067_v29, %v3043_v28  ;;  %v4540_v40 = vpop.f32.mrb[40].mxu0  ;;  %v3113_v14 = vmax.f32 %v3081_v58, 0.0 }
 0x310   : > { %v3116_v22 = vmax.f32 %v3084_v23, 0.0  ;;  %v4684_v36 = vadd.f32 %v6043_v7, %v4540_v40  ;;  %v2888_v15 = vpop.f32.mrb[41].mxu0 }
 0x311   : > { %v3114_v45 = vmax.f32 %v3082_v38, 0.0  ;;  %v4687_v2 = vadd.f32 %v6037_v63, %v2888_v15  ;;  %v4541_v31 = vpop.f32.mrb[42].mxu0  ;;  %v3447_v38 = vld [vmem:[%s4959_s28 + $0x18] sm:$0xff] }
 0x312   : > { %v3048_v3 = vmul.f32 %v4684_v36, %v6061_v4  ;;  %v4690_v51 = vadd.f32 %v6046_v61, %v4541_v31  ;;  %v2891_v5 = vpop.f32.mrb[43].mxu0  ;;  %v3136_v10 = vpack.c.bf16 %v3116_v22, %v3115_v18  ;;  %v3445_v36 = vld [vmem:[%s4959_s28 + $0x8] sm:$0xff] }
 0x313   : > { %v3046_v24 = vmul.f32 %v4687_v2, %v6061_v4  ;;  %v4693_v21 = vadd.f32 %v6040_v37, %v2891_v5  ;;  %v3135_v9 = vpack.c.bf16 %v3114_v45, %v3113_v14 }
 0x314   : > { %v3087_v52 = vadd.f32 %v6067_v29, %v3048_v3  ;;  %v3049_v7 = vmul.f32 %v4690_v51, %v6061_v4 }
 0x315   : > { %v3085_v42 = vadd.f32 %v6067_v29, %v3046_v24  ;;  %v3047_v63 = vmul.f32 %v4693_v21, %v6061_v4  ;;  %4582 = vmatprep.mubr.bf16.mxu1 %v3135_v9  ;;  %v3450_v9 = vld [vmem:[%s4959_s28 + $0x30] sm:$0xff] }
 0x316   : > { %v3088_v30 = vadd.f32 %v6067_v29, %v3049_v7  ;;  %4583 = vmatmul.mubr.bf16.gmra.mrb[164].mxu1 %v3136_v10  ;;  %v3119_v39 = vmax.f32 %v3087_v52, 0.0 }
 0x317   : > { %v3086_v61 = vadd.f32 %v6067_v29, %v3047_v63  ;;  %v4544_v12 = vpop.f32.mrb[44].mxu0  ;;  %v3117_v8 = vmax.f32 %v3085_v42, 0.0  ;;  %v3448_v63 = vld [vmem:[%s4959_s28 + $0x20] sm:$0xff] }
 0x318   : > { %v3120_v0 = vmax.f32 %v3088_v30, 0.0  ;;  %v4696_v37 = vadd.f32 %v6054_v59, %v4544_v12  ;;  %v2904_v48 = vpop.f32.mrb[45].mxu0 }
 0x319   : > { %v3118_v17 = vmax.f32 %v3086_v61, 0.0  ;;  %v4699_v13 = vadd.f32 %v6049_v19, %v2904_v48  ;;  %v4545_v32 = vpop.f32.mrb[46].mxu0 }
 0x31a   : > { %v3052_v57 = vmul.f32 %v4696_v37, %v6061_v4  ;;  %v4702_v50 = vadd.f32 %v6056_v60, %v4545_v32  ;;  %v2907_v49 = vpop.f32.mrb[47].mxu0  ;;  %v3138_v62 = vpack.c.bf16 %v3120_v0, %v3119_v39  ;;  %v3451_v39 = vld [vmem:[%s4959_s28 + $0x38] sm:$0xff] }
 0x31b   : > { %v3050_v16 = vmul.f32 %v4699_v13, %v6061_v4  ;;  %v4705_v20 = vadd.f32 %v6052_v26, %v2907_v49  ;;  %v3137_v44 = vpack.c.bf16 %v3118_v17, %v3117_v8  ;;  %v3449_v8 = vld [vmem:[%s4959_s28 + $0x28] sm:$0xff] }
 0x31c   : > { %v3091_v35 = vadd.f32 %v6067_v29, %v3052_v57  ;;  %v3053_v59 = vmul.f32 %v4702_v50, %v6061_v4 }
 0x31d   : > { %v3089_v56 = vadd.f32 %v6067_v29, %v3050_v16  ;;  %v3051_v19 = vmul.f32 %v4705_v20, %v6061_v4  ;;  %4586 = vmatprep.mubr.bf16.mxu1 %v3137_v44  ;;  %v6167_v4 = vld [vmem:[%s6357_s8] ss:$0 sm:$0xff] }
 0x31e   : > { %v3092_v43 = vadd.f32 %v6067_v29, %v3053_v59  ;;  %4587 = vmatmul.mubr.bf16.gmra.mrb[168].mxu1 %v3138_v62  ;;  %v3123_v53 = vmax.f32 %v3091_v35, 0.0  ;;  %v3454_v59 = vld [vmem:[%s4959_s28 + $0x50] sm:$0xff] }
 0x31f   : > { %v3090_v60 = vadd.f32 %v6067_v29, %v3051_v19  ;;  %v3121_v26 = vmax.f32 %v3089_v56, 0.0  ;;  %v6172_v29 = vld [vmem:[%s6358_s9] ss:$0 sm:$0xff] }
 0x320   : > { %v3124_v46 = vmax.f32 %v3092_v43, 0.0 }
 0x321   : > { %v3122_v34 = vmax.f32 %v3090_v60, 0.0  ;;  %v3452_v60 = vld [vmem:[%s4959_s28 + $0x40] sm:$0xff] }
 0x322   : > { %v3140_v47 = vpack.c.bf16 %v3124_v46, %v3123_v53 }
 0x323   : > { %v3139_v55 = vpack.c.bf16 %v3122_v34, %v3121_v26  ;;  %v3455_v34 = vld [vmem:[%s4959_s28 + $0x58] sm:$0xff] }
 0x325   : > { %4590 = vmatprep.mubr.bf16.mxu1 %v3139_v55 }
 0x326   : > { %4591 = vmatmul.mubr.bf16.gmra.mrb[172].mxu1 %v3140_v47 }
 0x3c1   : > { %v4564_v11 = vpop.f32.mrb[144].mxu1 }
 0x3c2   : > { %v3375_v25 = vmul.f32 %v4564_v11, %v6167_v4  ;;  %v3239_v27 = vpop.f32.mrb[145].mxu1 }
 0x3c3   : > { %v3373_v54 = vmul.f32 %v6167_v4, %v3239_v27  ;;  %v4565_v6 = vpop.f32.mrb[146].mxu1 }
 0x3c4   : > { %v3414_v33 = vadd.f32 %v6172_v29, %v3375_v25  ;;  %v3376_v58 = vmul.f32 %v4565_v6, %v6167_v4  ;;  %v3242_v28 = vpop.f32.mrb[147].mxu1  ;;  %v3453_v25 = vld [vmem:[%s4959_s28 + $0x48] sm:$0xff] }
 0x3c5   : > { %v3412_v23 = vadd.f32 %v6172_v29, %v3373_v54  ;;  %v3374_v40 = vmul.f32 %v6167_v4, %v3242_v28 }
 0x3c6   : > { %v3478_v18 = vadd.f32 %v3446_v41, %v3414_v33  ;;  %v3415_v22 = vadd.f32 %v6172_v29, %v3376_v58 }
 0x3c7   : > { %v3476_v15 = vadd.f32 %v3444_v1, %v3412_v23  ;;  %v3413_v14 = vadd.f32 %v6172_v29, %v3374_v40 }
 0x3c8   : > { %3510 = vst [vmem:[%s6184_s19 + $0x10] sm:$0xff] %v3478_v18  ;;  %v3542_v45 = vmax.f32 %v3478_v18, 0.0  ;;  %v3479_v2 = vadd.f32 %v3447_v38, %v3415_v22  ;;  %v3458_v18 = vld [vmem:[%s4959_s28 + $0x70] sm:$0xff] }
 0x3c9   : > { %3508 = vst [vmem:[%s6184_s19] sm:$0xff] %v3476_v15  ;;  %v3540_v31 = vmax.f32 %v3476_v15, 0.0  ;;  %v3477_v3 = vadd.f32 %v3445_v36, %v3413_v14  ;;  %v4568_v51 = vpop.f32.mrb[148].mxu1  ;;  %v3456_v14 = vld [vmem:[%s4959_s28 + $0x60] sm:$0xff] }
 0x3ca   : > { %3574 = vst [vmem:[%s6195_s22 + $0x10] sm:$0xff] %v3542_v45  ;;  %3511 = vst [vmem:[%s6184_s19 + $0x18] sm:$0xff] %v3479_v2  ;;  %v3543_v5 = vmax.f32 %v3479_v2, 0.0  ;;  %v3379_v10 = vmul.f32 %v4568_v51, %v6167_v4  ;;  %v3255_v24 = vpop.f32.mrb[149].mxu1 }
 0x3cb   : > { %3572 = vst [vmem:[%s6195_s22] sm:$0xff] %v3540_v31  ;;  %3509 = vst [vmem:[%s6184_s19 + $0x8] sm:$0xff] %v3477_v3  ;;  %v3541_v21 = vmax.f32 %v3477_v3, 0.0  ;;  %v3377_v52 = vmul.f32 %v6167_v4, %v3255_v24  ;;  %v4569_v7 = vpop.f32.mrb[150].mxu1  ;;  %v3459_v3 = vld [vmem:[%s4959_s28 + $0x78] sm:$0xff]  ;;  %v3457_v24 = vld [vmem:[%s4959_s28 + $0x68] sm:$0xff] }
 0x3cc   : > { %3575 = vst [vmem:[%s6195_s22 + $0x18] sm:$0xff] %v3543_v5  ;;  %v3418_v42 = vadd.f32 %v6172_v29, %v3379_v10  ;;  %v3380_v30 = vmul.f32 %v4569_v7, %v6167_v4  ;;  %v3258_v61 = vpop.f32.mrb[151].mxu1 }
 0x3cd   : > { %3573 = vst [vmem:[%s6195_s22 + $0x8] sm:$0xff] %v3541_v21  ;;  %v3416_v12 = vadd.f32 %v6172_v29, %v3377_v52  ;;  %v3378_v0 = vmul.f32 %v6167_v4, %v3258_v61 }
 0x3ce   : > { %v3482_v37 = vadd.f32 %v3450_v9, %v3418_v42  ;;  %v3419_v48 = vadd.f32 %v6172_v29, %v3380_v30 }
 0x3cf   : > { %v3480_v17 = vadd.f32 %v3448_v63, %v3416_v12  ;;  %v3417_v13 = vadd.f32 %v6172_v29, %v3378_v0 }
 0x3d0   : > { %3514 = vst [vmem:[%s6184_s19 + $0x30] sm:$0xff] %v3482_v37  ;;  %v3546_v32 = vmax.f32 %v3482_v37, 0.0  ;;  %v3483_v57 = vadd.f32 %v3451_v39, %v3419_v48  ;;  %v3462_v37 = vld [vmem:[%s4959_s28 + $0x90] sm:$0xff] }
 0x3d1   : > { %3512 = vst [vmem:[%s6184_s19 + $0x20] sm:$0xff] %v3480_v17  ;;  %v3544_v50 = vmax.f32 %v3480_v17, 0.0  ;;  %v3481_v49 = vadd.f32 %v3449_v8, %v3417_v13  ;;  %v4572_v62 = vpop.f32.mrb[152].mxu1  ;;  %v3460_v13 = vld [vmem:[%s4959_s28 + $0x80] sm:$0xff] }
 0x3d2   : > { %3578 = vst [vmem:[%s6195_s22 + $0x30] sm:$0xff] %v3546_v32  ;;  %3515 = vst [vmem:[%s6184_s19 + $0x38] sm:$0xff] %v3483_v57  ;;  %v3547_v16 = vmax.f32 %v3483_v57, 0.0  ;;  %v3383_v20 = vmul.f32 %v4572_v62, %v6167_v4  ;;  %v3271_v44 = vpop.f32.mrb[153].mxu1 }
 0x3d3   : > { %3576 = vst [vmem:[%s6195_s22 + $0x20] sm:$0xff] %v3544_v50  ;;  %3513 = vst [vmem:[%s6184_s19 + $0x28] sm:$0xff] %v3481_v49  ;;  %v3545_v35 = vmax.f32 %v3481_v49, 0.0  ;;  %v3381_v56 = vmul.f32 %v6167_v4, %v3271_v44  ;;  %v4573_v19 = vpop.f32.mrb[154].mxu1  ;;  %v3463_v49 = vld [vmem:[%s4959_s28 + $0x98] sm:$0xff]  ;;  %v3461_v44 = vld [vmem:[%s4959_s28 + $0x88] sm:$0xff] }
 0x3d4   : > { %3579 = vst [vmem:[%s6195_s22 + $0x38] sm:$0xff] %v3547_v16  ;;  %v3422_v43 = vadd.f32 %v6172_v29, %v3383_v20  ;;  %v3384_v53 = vmul.f32 %v4573_v19, %v6167_v4  ;;  %v3274_v46 = vpop.f32.mrb[155].mxu1 }
 0x3d5   : > { %3577 = vst [vmem:[%s6195_s22 + $0x28] sm:$0xff] %v3545_v35  ;;  %v3420_v26 = vadd.f32 %v6172_v29, %v3381_v56  ;;  %v3382_v47 = vmul.f32 %v6167_v4, %v3274_v46 }
 0x3d6   : > { %v3486_v55 = vadd.f32 %v3454_v59, %v3422_v43  ;;  %v3423_v11 = vadd.f32 %v6172_v29, %v3384_v53 }
 0x3d7   : > { %v3484_v27 = vadd.f32 %v3452_v60, %v3420_v26  ;;  %v3421_v41 = vadd.f32 %v6172_v29, %v3382_v47 }
 0x3d8   : > { %3518 = vst [vmem:[%s6184_s19 + $0x50] sm:$0xff] %v3486_v55  ;;  %v3550_v54 = vmax.f32 %v3486_v55, 0.0  ;;  %v3487_v6 = vadd.f32 %v3455_v34, %v3423_v11  ;;  %v3466_v55 = vld [vmem:[%s4959_s28 + $0xb0] sm:$0xff] }
 0x3d9   : > { %3516 = vst [vmem:[%s6184_s19 + $0x40] sm:$0xff] %v3484_v27  ;;  %v3548_v33 = vmax.f32 %v3484_v27, 0.0  ;;  %v3485_v1 = vadd.f32 %v3453_v25, %v3421_v41  ;;  %v4576_v58 = vpop.f32.mrb[156].mxu1  ;;  %v3464_v41 = vld [vmem:[%s4959_s28 + $0xa0] sm:$0xff] }
 0x3da   : > { %3582 = vst [vmem:[%s6195_s22 + $0x50] sm:$0xff] %v3550_v54  ;;  %3519 = vst [vmem:[%s6184_s19 + $0x58] sm:$0xff] %v3487_v6  ;;  %v3551_v28 = vmax.f32 %v3487_v6, 0.0  ;;  %v3387_v23 = vmul.f32 %v4576_v58, %v6167_v4  ;;  %v3287_v38 = vpop.f32.mrb[157].mxu1 }
 0x3db   : > { %3580 = vst [vmem:[%s6195_s22 + $0x40] sm:$0xff] %v3548_v33  ;;  %3517 = vst [vmem:[%s6184_s19 + $0x48] sm:$0xff] %v3485_v1  ;;  %v3549_v40 = vmax.f32 %v3485_v1, 0.0  ;;  %v3385_v22 = vmul.f32 %v6167_v4, %v3287_v38  ;;  %v4577_v36 = vpop.f32.mrb[158].mxu1  ;;  %v3467_v1 = vld [vmem:[%s4959_s28 + $0xb8] sm:$0xff]  ;;  %v3465_v38 = vld [vmem:[%s4959_s28 + $0xa8] sm:$0xff] }
 0x3dc   : > { %3583 = vst [vmem:[%s6195_s22 + $0x58] sm:$0xff] %v3551_v28  ;;  %v3426_v15 = vadd.f32 %v6172_v29, %v3387_v23  ;;  %v3388_v45 = vmul.f32 %v4577_v36, %v6167_v4  ;;  %v3290_v2 = vpop.f32.mrb[159].mxu1 }
 0x3dd   : > { %3581 = vst [vmem:[%s6195_s22 + $0x48] sm:$0xff] %v3549_v40  ;;  %v3424_v31 = vadd.f32 %v6172_v29, %v3385_v22  ;;  %v3386_v51 = vmul.f32 %v6167_v4, %v3290_v2 }
 0x3de   : > { %v3490_v5 = vadd.f32 %v3458_v18, %v3426_v15  ;;  %v3427_v10 = vadd.f32 %v6172_v29, %v3388_v45 }
 0x3df   : > { %v3488_v21 = vadd.f32 %v3456_v14, %v3424_v31  ;;  %v3425_v9 = vadd.f32 %v6172_v29, %v3386_v51 }
 0x3e0   : > { %3522 = vst [vmem:[%s6184_s19 + $0x70] sm:$0xff] %v3490_v5  ;;  %v3554_v52 = vmax.f32 %v3490_v5, 0.0  ;;  %v3491_v7 = vadd.f32 %v3459_v3, %v3427_v10  ;;  %v3470_v5 = vld [vmem:[%s4959_s28 + $0xd0] sm:$0xff] }
 0x3e1   : > { %3520 = vst [vmem:[%s6184_s19 + $0x60] sm:$0xff] %v3488_v21  ;;  %v3552_v42 = vmax.f32 %v3488_v21, 0.0  ;;  %v3489_v63 = vadd.f32 %v3457_v24, %v3425_v9  ;;  %v4580_v30 = vpop.f32.mrb[160].mxu1  ;;  %v3468_v9 = vld [vmem:[%s4959_s28 + $0xc0] sm:$0xff] }
 0x3e2   : > { %3586 = vst [vmem:[%s6195_s22 + $0x70] sm:$0xff] %v3554_v52  ;;  %3523 = vst [vmem:[%s6184_s19 + $0x78] sm:$0xff] %v3491_v7  ;;  %v3555_v61 = vmax.f32 %v3491_v7, 0.0  ;;  %v3391_v12 = vmul.f32 %v4580_v30, %v6167_v4  ;;  %v3303_v39 = vpop.f32.mrb[161].mxu1 }
 0x3e3   : > { %3584 = vst [vmem:[%s6195_s22 + $0x60] sm:$0xff] %v3552_v42  ;;  %3521 = vst [vmem:[%s6184_s19 + $0x68] sm:$0xff] %v3489_v63  ;;  %v3553_v0 = vmax.f32 %v3489_v63, 0.0  ;;  %v3389_v48 = vmul.f32 %v6167_v4, %v3303_v39  ;;  %v4581_v8 = vpop.f32.mrb[162].mxu1  ;;  %v3471_v63 = vld [vmem:[%s4959_s28 + $0xd8] sm:$0xff]  ;;  %v3469_v39 = vld [vmem:[%s4959_s28 + $0xc8] sm:$0xff] }
 0x3e4   : > { %3587 = vst [vmem:[%s6195_s22 + $0x78] sm:$0xff] %v3555_v61  ;;  %v3430_v17 = vadd.f32 %v6172_v29, %v3391_v12  ;;  %v3392_v32 = vmul.f32 %v4581_v8, %v6167_v4  ;;  %v3306_v57 = vpop.f32.mrb[163].mxu1 }
 0x3e5   : > { %3585 = vst [vmem:[%s6195_s22 + $0x68] sm:$0xff] %v3553_v0  ;;  %v3428_v50 = vadd.f32 %v6172_v29, %v3389_v48  ;;  %v3390_v62 = vmul.f32 %v6167_v4, %v3306_v57 }
 0x3e6   : > { %v3494_v16 = vadd.f32 %v3462_v37, %v3430_v17  ;;  %v3431_v20 = vadd.f32 %v6172_v29, %v3392_v32 }
 0x3e7   : > { %v3492_v35 = vadd.f32 %v3460_v13, %v3428_v50  ;;  %v3429_v59 = vadd.f32 %v6172_v29, %v3390_v62 }
 0x3e8   : > { %3526 = vst [vmem:[%s6184_s19 + $0x90] sm:$0xff] %v3494_v16  ;;  %v3558_v56 = vmax.f32 %v3494_v16, 0.0  ;;  %v3495_v19 = vadd.f32 %v3463_v49, %v3431_v20  ;;  %v3474_v16 = vld [vmem:[%s4959_s28 + $0xf0] sm:$0xff] }
 0x3e9   : > { %3524 = vst [vmem:[%s6184_s19 + $0x80] sm:$0xff] %v3492_v35  ;;  %v3556_v43 = vmax.f32 %v3492_v35, 0.0  ;;  %v3493_v60 = vadd.f32 %v3461_v44, %v3429_v59  ;;  %v4584_v53 = vpop.f32.mrb[164].mxu1  ;;  %v3472_v59 = vld [vmem:[%s4959_s28 + $0xe0] sm:$0xff] }
 0x3ea   : > { %3590 = vst [vmem:[%s6195_s22 + $0x90] sm:$0xff] %v3558_v56  ;;  %3527 = vst [vmem:[%s6184_s19 + $0x98] sm:$0xff] %v3495_v19  ;;  %v3559_v46 = vmax.f32 %v3495_v19, 0.0  ;;  %v3395_v26 = vmul.f32 %v4584_v53, %v6167_v4  ;;  %v3319_v34 = vpop.f32.mrb[165].mxu1 }
 0x3eb   : > { %3588 = vst [vmem:[%s6195_s22 + $0x80] sm:$0xff] %v3556_v43  ;;  %3525 = vst [vmem:[%s6184_s19 + $0x88] sm:$0xff] %v3493_v60  ;;  %v3557_v47 = vmax.f32 %v3493_v60, 0.0  ;;  %v3393_v11 = vmul.f32 %v6167_v4, %v3319_v34  ;;  %v4585_v25 = vpop.f32.mrb[166].mxu1  ;;  %v3475_v60 = vld [vmem:[%s4959_s28 + $0xf8] sm:$0xff]  ;;  %v3473_v34 = vld [vmem:[%s4959_s28 + $0xe8] sm:$0xff] }
 0x3ec   : > { %3591 = vst [vmem:[%s6195_s22 + $0x98] sm:$0xff] %v3559_v46  ;;  %v3434_v27 = vadd.f32 %v6172_v29, %v3395_v26  ;;  %v3396_v54 = vmul.f32 %v4585_v25, %v6167_v4  ;;  %v3322_v6 = vpop.f32.mrb[167].mxu1 }
 0x3ed   : > { %3589 = vst [vmem:[%s6195_s22 + $0x88] sm:$0xff] %v3557_v47  ;;  %v3432_v33 = vadd.f32 %v6172_v29, %v3393_v11  ;;  %v3394_v58 = vmul.f32 %v6167_v4, %v3322_v6 }
 0x3ee   : > { %v3498_v28 = vadd.f32 %v3466_v55, %v3434_v27  ;;  %v3435_v23 = vadd.f32 %v6172_v29, %v3396_v54 }
 0x3ef   : > { %v3496_v40 = vadd.f32 %v3464_v41, %v3432_v33  ;;  %v3433_v18 = vadd.f32 %v6172_v29, %v3394_v58 }
 0x3f0   : > { %3530 = vst [vmem:[%s6184_s19 + $0xb0] sm:$0xff] %v3498_v28  ;;  %v3562_v22 = vmax.f32 %v3498_v28, 0.0  ;;  %v3499_v36 = vadd.f32 %v3467_v1, %v3435_v23 }
 0x3f1   : > { %3528 = vst [vmem:[%s6184_s19 + $0xa0] sm:$0xff] %v3496_v40  ;;  %v3560_v15 = vmax.f32 %v3496_v40, 0.0  ;;  %v3497_v14 = vadd.f32 %v3465_v38, %v3433_v18  ;;  %v4588_v45 = vpop.f32.mrb[168].mxu1 }
 0x3f2   : > { %3594 = vst [vmem:[%s6195_s22 + $0xb0] sm:$0xff] %v3562_v22  ;;  %3531 = vst [vmem:[%s6184_s19 + $0xb8] sm:$0xff] %v3499_v36  ;;  %v3563_v2 = vmax.f32 %v3499_v36, 0.0  ;;  %v3399_v31 = vmul.f32 %v4588_v45, %v6167_v4  ;;  %v3335_v3 = vpop.f32.mrb[169].mxu1 }
 0x3f3   : > { %3592 = vst [vmem:[%s6195_s22 + $0xa0] sm:$0xff] %v3560_v15  ;;  %3529 = vst [vmem:[%s6184_s19 + $0xa8] sm:$0xff] %v3497_v14  ;;  %v3561_v51 = vmax.f32 %v3497_v14, 0.0  ;;  %v3397_v10 = vmul.f32 %v6167_v4, %v3335_v3  ;;  %v4589_v24 = vpop.f32.mrb[170].mxu1 }
 0x3f4   : > { %3595 = vst [vmem:[%s6195_s22 + $0xb8] sm:$0xff] %v3563_v2  ;;  %v3438_v21 = vadd.f32 %v6172_v29, %v3399_v31  ;;  %v3400_v52 = vmul.f32 %v4589_v24, %v6167_v4  ;;  %v3338_v7 = vpop.f32.mrb[171].mxu1 }
 0x3f5   : > { %3593 = vst [vmem:[%s6195_s22 + $0xa8] sm:$0xff] %v3561_v51  ;;  %v3436_v42 = vadd.f32 %v6172_v29, %v3397_v10  ;;  %v3398_v30 = vmul.f32 %v6167_v4, %v3338_v7 }
 0x3f6   : > { %v3502_v61 = vadd.f32 %v3470_v5, %v3438_v21  ;;  %v3439_v12 = vadd.f32 %v6172_v29, %v3400_v52 }
 0x3f7   : > { %v3500_v0 = vadd.f32 %v3468_v9, %v3436_v42  ;;  %v3437_v37 = vadd.f32 %v6172_v29, %v3398_v30 }
 0x3f8   : > { %3534 = vst [vmem:[%s6184_s19 + $0xd0] sm:$0xff] %v3502_v61  ;;  %v3566_v48 = vmax.f32 %v3502_v61, 0.0  ;;  %v3503_v8 = vadd.f32 %v3471_v63, %v3439_v12 }
 0x3f9   : > { %3532 = vst [vmem:[%s6184_s19 + $0xc0] sm:$0xff] %v3500_v0  ;;  %v3564_v17 = vmax.f32 %v3500_v0, 0.0  ;;  %v3501_v13 = vadd.f32 %v3469_v39, %v3437_v37  ;;  %v4592_v32 = vpop.f32.mrb[172].mxu1 }
 0x3fa   : > { %3598 = vst [vmem:[%s6195_s22 + $0xd0] sm:$0xff] %v3566_v48  ;;  %3535 = vst [vmem:[%s6184_s19 + $0xd8] sm:$0xff] %v3503_v8  ;;  %v3567_v57 = vmax.f32 %v3503_v8, 0.0  ;;  %v3403_v50 = vmul.f32 %v4592_v32, %v6167_v4  ;;  %v3351_v49 = vpop.f32.mrb[173].mxu1 }
 0x3fb   : > { %3596 = vst [vmem:[%s6195_s22 + $0xc0] sm:$0xff] %v3564_v17  ;;  %3533 = vst [vmem:[%s6184_s19 + $0xc8] sm:$0xff] %v3501_v13  ;;  %v3565_v62 = vmax.f32 %v3501_v13, 0.0  ;;  %v3401_v20 = vmul.f32 %v6167_v4, %v3351_v49  ;;  %v4593_v44 = vpop.f32.mrb[174].mxu1 }
 0x3fc   : > { %3599 = vst [vmem:[%s6195_s22 + $0xd8] sm:$0xff] %v3567_v57  ;;  %v3442_v35 = vadd.f32 %v6172_v29, %v3403_v50  ;;  %v3404_v56 = vmul.f32 %v4593_v44, %v6167_v4  ;;  %v3354_v19 = vpop.f32.mrb[175].mxu1 }
 0x3fd   : > { %3597 = vst [vmem:[%s6195_s22 + $0xc8] sm:$0xff] %v3565_v62  ;;  %v3440_v43 = vadd.f32 %v6172_v29, %v3401_v20  ;;  %v3402_v53 = vmul.f32 %v6167_v4, %v3354_v19 }
 0x3fe   : > { %v3506_v46 = vadd.f32 %v3474_v16, %v3442_v35  ;;  %v3443_v26 = vadd.f32 %v6172_v29, %v3404_v56 }
 0x3ff   : > { %v3504_v47 = vadd.f32 %v3472_v59, %v3440_v43  ;;  %v3441_v55 = vadd.f32 %v6172_v29, %v3402_v53 }
 0x400   : > { %3538 = vst [vmem:[%s6184_s19 + $0xf0] sm:$0xff] %v3506_v46  ;;  %v3570_v11 = vmax.f32 %v3506_v46, 0.0  ;;  %v3507_v25 = vadd.f32 %v3475_v60, %v3443_v26 }
 0x401   : > { %3536 = vst [vmem:[%s6184_s19 + $0xe0] sm:$0xff] %v3504_v47  ;;  %v3568_v27 = vmax.f32 %v3504_v47, 0.0  ;;  %v3505_v41 = vadd.f32 %v3473_v34, %v3441_v55 }
 0x402   : > { %3602 = vst [vmem:[%s6195_s22 + $0xf0] sm:$0xff] %v3570_v11  ;;  %3539 = vst [vmem:[%s6184_s19 + $0xf8] sm:$0xff] %v3507_v25  ;;  %v3571_v54 = vmax.f32 %v3507_v25, 0.0 }
 0x403   : > { %3600 = vst [vmem:[%s6195_s22 + $0xe0] sm:$0xff] %v3568_v27  ;;  %3537 = vst [vmem:[%s6184_s19 + $0xe8] sm:$0xff] %v3505_v41  ;;  %v3569_v4 = vmax.f32 %v3505_v41, 0.0 }
 0x404   : > { %3603 = vst [vmem:[%s6195_s22 + $0xf8] sm:$0xff] %v3571_v54 }
 0x405   : > { %3601 = vst [vmem:[%s6195_s22 + $0xe8] sm:$0xff] %v3569_v4 }
 0x406 PF: > { %s22_s17 = sadd.s32 1, %s4873_s17  }
 0x407   : > { %p19_p4 = scmp.ge.s32.totalorder %s22_s17, 4  }
 0x409   :  { %21 = sbr.rel (!%p19_p4) target bundleno = 1 (0x1), region = 107 }

</bundles_post_ra>
